<compile_context>
chip_gen: v5e
topology: v5e:2x2
jax: 0.10.0
libtpu: 0.0.40
codegen_flags: <defaults>
</compile_context>

<pallas_src>
import functools

import jax
import jax.numpy as jnp
from jax import lax
from jax.experimental import pallas as pl
from jax.experimental.pallas import tpu as pltpu


def _round_up(x, m):
    return (x + m - 1) // m * m


def _flce_body(x_ref, w_ref, b_ref, t_ref, o_ref,
               m_sc, l_sc, sx_sc, xy_sc, *,
               ignore_index, label_smoothing, lse_square_scale,
               vocab_size, tv, mask_vocab):
    """Grid = (token_blocks, vocab_blocks); vocab axis is the online-softmax reduction.

    Logits are computed transposed as (tv, tm) so all per-token quantities
    (running max / sum-exp / target logit / loss) are lane-dense (1, tm) rows.
    """
    vi = pl.program_id(1)

    @pl.when(vi == 0)
    def _():
        m_sc[...] = jnp.full_like(m_sc, -jnp.inf)
        l_sc[...] = jnp.zeros_like(l_sc)
        sx_sc[...] = jnp.zeros_like(sx_sc)
        xy_sc[...] = jnp.zeros_like(xy_sc)

    # Fused linear (transposed): logits^T tile = W_tile (tv,H) @ X_tile (tm,H)^T.
    # Native-dtype operands, f32 accumulation on the MXU.
    logits = lax.dot_general(
        w_ref[...], x_ref[...],
        dimension_numbers=(((1,), (1,)), ((), ())),
        preferred_element_type=jnp.float32)                   # (tv, tm) f32
    if b_ref is not None:
        logits = logits + b_ref[...].astype(jnp.float32)      # (tv, 1) broadcast over lanes

    tm = logits.shape[1]
    cls = vi * tv + lax.broadcasted_iota(jnp.int32, (tv, tm), 0)   # global class ids
    tgt = t_ref[...].reshape(1, tm)                                # (1, tm) int32

    if mask_vocab:
        valid_col = cls < vocab_size
        soft_logits = jnp.where(valid_col, logits, -1e30)     # padded classes never win
    else:
        soft_logits = logits

    # Target-class logit (each target falls in exactly one vocab tile / row).
    hit = cls == tgt
    xy_sc[...] += jnp.sum(jnp.where(hit, logits, 0.0), axis=0, keepdims=True)

    # Sum of all (real) logits, only needed for label smoothing.
    if label_smoothing != 0.0:
        if mask_vocab:
            sum_logits = jnp.where(cls < vocab_size, logits, 0.0)
        else:
            sum_logits = logits
        sx_sc[...] += jnp.sum(sum_logits, axis=0, keepdims=True)

    # Online logsumexp over the vocab dimension.
    m_prev = m_sc[...]
    m_new = jnp.maximum(m_prev, jnp.max(soft_logits, axis=0, keepdims=True))
    l_sc[...] = l_sc[...] * jnp.exp(m_prev - m_new) + jnp.sum(
        jnp.exp(soft_logits - m_new), axis=0, keepdims=True)
    m_sc[...] = m_new

    @pl.when(vi == pl.num_programs(1) - 1)
    def _():
        lse = m_sc[...] + jnp.log(l_sc[...])
        eps = label_smoothing
        # Liger semantics:
        #   loss = lse - (1 - eps) * x_target - (eps / V) * sum_j x_j  (+ z * lse^2)
        if eps != 0.0:
            loss = lse - (1.0 - eps) * xy_sc[...] - (eps / vocab_size) * sx_sc[...]
        else:
            loss = lse - xy_sc[...]
        if lse_square_scale != 0.0:
            loss = loss + lse_square_scale * lse * lse
        valid = tgt != ignore_index
        o_ref[...] = jnp.where(valid, loss, 0.0).reshape(o_ref.shape)


def liger_fused_linear_cross_entropy(lin_weight, _input, target, bias=None, *,
                                     ignore_index=-100, label_smoothing=0.0,
                                     reduction="mean", lse_square_scale=0.0,
                                     tm=None, tv=None,
                                     vmem_limit_bytes=48 * 1024 * 1024):
    """Forward pass of LigerFusedLinearCrossEntropyLoss.

    lin_weight: (V, H), _input: (BT, H), target: (BT,), bias: (V,) or None.
    Returns a scalar loss ('mean' / 'sum') or per-token losses ('none').
    """
    BT, H = _input.shape
    V, H2 = lin_weight.shape
    assert H == H2, "hidden dims of _input and lin_weight must match"

    if lin_weight.dtype != _input.dtype:
        cdt = jnp.promote_types(lin_weight.dtype, _input.dtype)
        lin_weight = lin_weight.astype(cdt)
        _input = _input.astype(cdt)

    in_isz = jnp.dtype(_input.dtype).itemsize
    w_isz = jnp.dtype(lin_weight.dtype).itemsize

    # --- tile selection ------------------------------------------------------
    if tm is None:                     # big token tile for MXU M-dim + weight reuse,
        if BT >= 512:                  # keep >=2 token blocks so the 'parallel' axis
            tm = 256                   # can still split across v7x's two TensorCores.
        elif BT >= 128:
            tm = 128
        else:
            tm = _round_up(BT, 8)
    tm = max(8, _round_up(tm, 8))

    if tv is None:                     # vocab tile as big as a ~40 MiB VMEM budget allows
        budget = 40 * 1024 * 1024      # (weight tile is double-buffered by the pipeline).
        x_bytes = 2 * tm * H * in_isz
        per_tv = 2 * H * w_isz + 16 * tm   # weight row + f32 logits working set per column
        tv = max(budget - x_bytes, 0) // per_tv
        tv = min(2048, max(128, (tv // 128) * 128))
    tv = max(128, _round_up(tv, 128))
    tv = min(tv, _round_up(V, 128))

    BT_pad = _round_up(BT, tm)
    V_pad = _round_up(V, tv)
    mask_vocab = V_pad != V

    # --- pad operands (padded tokens get ignore_index; padded classes masked in-kernel)
    x_p = _input if BT_pad == BT else jnp.pad(_input, ((0, BT_pad - BT), (0, 0)))
    w_p = lin_weight if V_pad == V else jnp.pad(lin_weight, ((0, V_pad - V), (0, 0)))
    tgt = target.astype(jnp.int32)
    if BT_pad != BT:
        tgt = jnp.pad(tgt, (0, BT_pad - BT), constant_values=ignore_index)
    n_tb = BT_pad // tm
    tgt3d = tgt.reshape(n_tb, 1, tm)            # lane-dense target blocks (1, 1, tm)

    has_bias = bias is not None
    body = functools.partial(
        _flce_body,
        ignore_index=ignore_index,
        label_smoothing=float(label_smoothing),
        lse_square_scale=float(lse_square_scale),
        vocab_size=V,
        tv=tv,
        mask_vocab=mask_vocab,
    )
    if has_bias:
        def kernel(x, w, b, t, o, m, l, sx, xy):
            body(x, w, b, t, o, m, l, sx, xy)
    else:
        def kernel(x, w, t, o, m, l, sx, xy):
            body(x, w, None, t, o, m, l, sx, xy)

    in_specs = [
        pl.BlockSpec((tm, H), lambda ti, vi: (ti, 0)),        # _input tile
        pl.BlockSpec((tv, H), lambda ti, vi: (vi, 0)),        # weight tile
    ]
    operands = [x_p, w_p]
    if has_bias:
        b2 = bias.astype(jnp.float32).reshape(V, 1)
        if V_pad != V:
            b2 = jnp.pad(b2, ((0, V_pad - V), (0, 0)))
        in_specs.append(pl.BlockSpec((tv, 1), lambda ti, vi: (vi, 0)))  # bias column
        operands.append(b2)
    in_specs.append(pl.BlockSpec((1, 1, tm), lambda ti, vi: (ti, 0, 0)))  # targets
    operands.append(tgt3d)

    per_token = pl.pallas_call(
        kernel,
        out_shape=jax.ShapeDtypeStruct((n_tb, 1, tm), jnp.float32),
        grid_spec=pltpu.PrefetchScalarGridSpec(
            num_scalar_prefetch=0,
            grid=(n_tb, V_pad // tv),
            in_specs=in_specs,
            out_specs=pl.BlockSpec((1, 1, tm), lambda ti, vi: (ti, 0, 0)),
            scratch_shapes=[
                pltpu.VMEM((1, tm), jnp.float32),   # running max
                pltpu.VMEM((1, tm), jnp.float32),   # running sum-exp
                pltpu.VMEM((1, tm), jnp.float32),   # running sum of logits
                pltpu.VMEM((1, tm), jnp.float32),   # target logit
            ],
        ),
        compiler_params=pltpu.CompilerParams(
            dimension_semantics=("parallel", "arbitrary"),
            vmem_limit_bytes=vmem_limit_bytes),
    )(*operands)

    per_token = per_token.reshape(BT_pad)[:BT]
    if reduction == "none":
        return per_token
    loss_sum = jnp.sum(per_token)
    if reduction == "mean":
        n_valid = jnp.sum((target != ignore_index).astype(jnp.float32))
        return loss_sum / jnp.maximum(n_valid, 1.0)
    return loss_sum   # 'sum'


def _reference(lin_weight, _input, target, bias, ignore_index,
               label_smoothing, reduction, lse_square_scale):
    """Pure-JAX reference for correctness checking."""
    logits = _input.astype(jnp.float32) @ lin_weight.astype(jnp.float32).T
    if bias is not None:
        logits = logits + bias.astype(jnp.float32)
    lse = jax.nn.logsumexp(logits, axis=-1)
    V = logits.shape[-1]
    tgt = jnp.clip(target, 0, V - 1)
    x_y = jnp.take_along_axis(logits, tgt[:, None], axis=-1)[:, 0]
    eps = label_smoothing
    loss = lse - (1.0 - eps) * x_y - (eps / V) * jnp.sum(logits, axis=-1)
    loss = loss + lse_square_scale * lse * lse
    valid = target != ignore_index
    loss = jnp.where(valid, loss, 0.0)
    if reduction == "mean":
        return jnp.sum(loss) / jnp.maximum(jnp.sum(valid.astype(jnp.float32)), 1.0)
    return jnp.sum(loss)


if __name__ == "__main__":
    # Small, module-consistent shapes: BT = batch*seq = 4*32 = 128 tokens,
    # hidden = 64, vocab = 320 (not a multiple of 128 -> exercises vocab padding/masking).
    BT, H, V = 128, 64, 320
    ignore_index = -100

    key = jax.random.PRNGKey(0)
    k_x, k_w, k_b, k_t = jax.random.split(key, 4)
    _input = jax.random.normal(k_x, (BT, H), dtype=jnp.float32)
    lin_weight = jax.random.normal(k_w, (V, H), dtype=jnp.float32) * 0.05
    bias = jax.random.normal(k_b, (V,), dtype=jnp.float32) * 0.01
    target = jax.random.randint(k_t, (BT,), 0, V, dtype=jnp.int32)
    target = target.at[3].set(ignore_index)   # exercise ignore_index path

    # 1) auto tiles, bias, mean reduction, label smoothing + z-loss.
    loss = liger_fused_linear_cross_entropy(
        lin_weight, _input, target, bias,
        ignore_index=ignore_index, label_smoothing=0.1,
        reduction="mean", lse_square_scale=1e-4)
    loss = jax.block_until_ready(loss)
    ref = _reference(lin_weight, _input, target, bias, ignore_index,
                     0.1, "mean", 1e-4)
    assert jnp.allclose(loss, ref, rtol=1e-5, atol=1e-5), (loss, ref)

    # 2) explicit small tiles (multiple vocab reduction steps), no bias, sum reduction.
    loss2 = liger_fused_linear_cross_entropy(
        lin_weight, _input, target, None,
        ignore_index=ignore_index, label_smoothing=0.0,
        reduction="sum", lse_square_scale=0.0, tm=32, tv=128)
    loss2 = jax.block_until_ready(loss2)
    ref2 = _reference(lin_weight, _input, target, None, ignore_index,
                      0.0, "sum", 0.0)
    assert jnp.allclose(loss2, ref2, rtol=1e-5, atol=1e-5), (loss2, ref2)

    print("KERNEL_OK")
</pallas_src>

<mosaic_0001>
module attributes {stable_mosaic.version = 11 : i64} {
  func.func @kernel(%arg0: i32, %arg1: i32, %arg2: memref<128x64xf32, #tpu.memory_space<vmem>>, %arg3: memref<384x64xf32, #tpu.memory_space<vmem>>, %arg4: memref<384x1xf32, #tpu.memory_space<vmem>>, %arg5: memref<1x1x128xi32, #tpu.memory_space<vmem>>, %arg6: memref<1x1x128xf32, #tpu.memory_space<vmem>>, %arg7: memref<1x128xf32, #tpu.memory_space<vmem>>, %arg8: memref<1x128xf32, #tpu.memory_space<vmem>>, %arg9: memref<1x128xf32, #tpu.memory_space<vmem>>, %arg10: memref<1x128xf32, #tpu.memory_space<vmem>>) attributes {dimension_semantics = [#tpu.dimension_semantics<parallel>, #tpu.dimension_semantics<arbitrary>], iteration_bounds = array<i64: 1, 1>, scalar_prefetch = 0 : i64, scratch_operands = 4 : i64, tpu.core_type = #tpu.core_type<tc>, window_params = [{transform_indices = @transform_0, window_bounds = array<i64: 128, 64>}, {transform_indices = @transform_1, window_bounds = array<i64: 384, 64>}, {transform_indices = @transform_2, window_bounds = array<i64: 384, 1>}, {transform_indices = @transform_3, window_bounds = array<i64: 1, 1, 128>}, {transform_indices = @transform_4, window_bounds = array<i64: 1, 1, 128>}]} {
    %c0_i32 = arith.constant 0 : i32
    %0 = arith.cmpi eq, %arg1, %c0_i32 : i32
    %1 = arith.extui %0 : i1 to i32
    %c0_i32_0 = arith.constant 0 : i32
    %2 = arith.cmpi ne, %1, %c0_i32_0 : i32
    scf.if %2 {
      %cst_35 = arith.constant 0xFF800000 : f32
      %56 = vector.broadcast %cst_35 : f32 to vector<1x128xf32>
      %c0_36 = arith.constant 0 : index
      %c0_37 = arith.constant 0 : index
      %57 = vector.load %arg7[%c0_36, %c0_37] : memref<1x128xf32, #tpu.memory_space<vmem>>, vector<1x128xf32>
      tpu.vector_store %arg7[%c0_36, %c0_37], %56 {strides = array<i32>} : memref<1x128xf32, #tpu.memory_space<vmem>>, vector<1x128xf32>,
      %cst_38 = arith.constant 0.000000e+00 : f32
      %58 = vector.broadcast %cst_38 : f32 to vector<1x128xf32>
      %c0_39 = arith.constant 0 : index
      %c0_40 = arith.constant 0 : index
      %59 = vector.load %arg8[%c0_39, %c0_40] : memref<1x128xf32, #tpu.memory_space<vmem>>, vector<1x128xf32>
      tpu.vector_store %arg8[%c0_39, %c0_40], %58 {strides = array<i32>} : memref<1x128xf32, #tpu.memory_space<vmem>>, vector<1x128xf32>,
      %cst_41 = arith.constant 0.000000e+00 : f32
      %60 = vector.broadcast %cst_41 : f32 to vector<1x128xf32>
      %c0_42 = arith.constant 0 : index
      %c0_43 = arith.constant 0 : index
      %61 = vector.load %arg9[%c0_42, %c0_43] : memref<1x128xf32, #tpu.memory_space<vmem>>, vector<1x128xf32>
      tpu.vector_store %arg9[%c0_42, %c0_43], %60 {strides = array<i32>} : memref<1x128xf32, #tpu.memory_space<vmem>>, vector<1x128xf32>,
      %cst_44 = arith.constant 0.000000e+00 : f32
      %62 = vector.broadcast %cst_44 : f32 to vector<1x128xf32>
      %c0_45 = arith.constant 0 : index
      %c0_46 = arith.constant 0 : index
      %63 = vector.load %arg10[%c0_45, %c0_46] : memref<1x128xf32, #tpu.memory_space<vmem>>, vector<1x128xf32>
      tpu.vector_store %arg10[%c0_45, %c0_46], %62 {strides = array<i32>} : memref<1x128xf32, #tpu.memory_space<vmem>>, vector<1x128xf32>,
    } else {
    }
    %c0 = arith.constant 0 : index
    %c0_1 = arith.constant 0 : index
    %3 = vector.load %arg3[%c0, %c0_1] : memref<384x64xf32, #tpu.memory_space<vmem>>, vector<384x64xf32>
    %c0_2 = arith.constant 0 : index
    %c0_3 = arith.constant 0 : index
    %4 = vector.load %arg2[%c0_2, %c0_3] : memref<128x64xf32, #tpu.memory_space<vmem>>, vector<128x64xf32>
    %cst = arith.constant dense<0.000000e+00> : vector<384x128xf32>
    %5 = tpu.matmul %3, %4, %cst {dimension_numbers = #tpu.dot_dimension_numbers<[1], [1], [0], [0], [0, 0, 1, 0], [], []>} : vector<384x64xf32>, vector<128x64xf32>, vector<384x128xf32> -> vector<384x128xf32>
    %c0_4 = arith.constant 0 : index
    %c0_5 = arith.constant 0 : index
    %6 = vector.load %arg4[%c0_4, %c0_5] : memref<384x1xf32, #tpu.memory_space<vmem>>, vector<384x1xf32>
    %7 = vector.broadcast %6 : vector<384x1xf32> to vector<384x128xf32>
    %8 = arith.addf %5, %7 : vector<384x128xf32>
    %c384_i32 = arith.constant 384 : i32
    %9 = arith.muli %arg1, %c384_i32 : i32
    %10 = tpu.iota {dimensions = array<i32: 0>} : vector<384x128xi32>
    %11 = vector.broadcast %9 : i32 to vector<384x128xi32>
    %12 = arith.addi %11, %10 : vector<384x128xi32>
    %c0_6 = arith.constant 0 : index
    %c0_7 = arith.constant 0 : index
    %c0_8 = arith.constant 0 : index
    %13 = vector.load %arg5[%c0_6, %c0_7, %c0_8] : memref<1x1x128xi32, #tpu.memory_space<vmem>>, vector<1x1x128xi32>
    %14 = vector.shape_cast %13 : vector<1x1x128xi32> to vector<1x128xi32>
    %c320_i32 = arith.constant 320 : i32
    %15 = vector.broadcast %c320_i32 : i32 to vector<384x128xi32>
    %16 = arith.cmpi slt, %12, %15 : vector<384x128xi32>
    %cst_9 = arith.constant -1.000000e+30 : f32
    %17 = vector.broadcast %cst_9 : f32 to vector<384x128xf32>
    %18 = arith.select %16, %8, %17 : vector<384x128xi1>, vector<384x128xf32>
    %19 = vector.broadcast %14 : vector<1x128xi32> to vector<384x128xi32>
    %20 = arith.cmpi eq, %12, %19 : vector<384x128xi32>
    %c0_10 = arith.constant 0 : index
    %c0_11 = arith.constant 0 : index
    %21 = vector.load %arg10[%c0_10, %c0_11] : memref<1x128xf32, #tpu.memory_space<vmem>>, vector<1x128xf32>
    %cst_12 = arith.constant 0.000000e+00 : f32
    %22 = vector.broadcast %cst_12 : f32 to vector<384x128xf32>
    %23 = arith.select %20, %8, %22 : vector<384x128xi1>, vector<384x128xf32>
    %cst_13 = arith.constant dense<0.000000e+00> : vector<128xf32>
    %24 = vector.multi_reduction <add>, %23, %cst_13 [0] : vector<384x128xf32> to vector<128xf32>
    %25 = vector.shape_cast %24 : vector<128xf32> to vector<1x128xf32>
    %26 = arith.addf %21, %25 : vector<1x128xf32>
    %c0_14 = arith.constant 0 : index
    %c0_15 = arith.constant 0 : index
    %27 = vector.load %arg10[%c0_14, %c0_15] : memref<1x128xf32, #tpu.memory_space<vmem>>, vector<1x128xf32>
    tpu.vector_store %arg10[%c0_14, %c0_15], %26 {strides = array<i32>} : memref<1x128xf32, #tpu.memory_space<vmem>>, vector<1x128xf32>,
    %c320_i32_16 = arith.constant 320 : i32
    %28 = vector.broadcast %c320_i32_16 : i32 to vector<384x128xi32>
    %29 = arith.cmpi slt, %12, %28 : vector<384x128xi32>
    %cst_17 = arith.constant 0.000000e+00 : f32
    %30 = vector.broadcast %cst_17 : f32 to vector<384x128xf32>
    %31 = arith.select %29, %8, %30 : vector<384x128xi1>, vector<384x128xf32>
    %c0_18 = arith.constant 0 : index
    %c0_19 = arith.constant 0 : index
    %32 = vector.load %arg9[%c0_18, %c0_19] : memref<1x128xf32, #tpu.memory_space<vmem>>, vector<1x128xf32>
    %cst_20 = arith.constant dense<0.000000e+00> : vector<128xf32>
    %33 = vector.multi_reduction <add>, %31, %cst_20 [0] : vector<384x128xf32> to vector<128xf32>
    %34 = vector.shape_cast %33 : vector<128xf32> to vector<1x128xf32>
    %35 = arith.addf %32, %34 : vector<1x128xf32>
    %c0_21 = arith.constant 0 : index
    %c0_22 = arith.constant 0 : index
    %36 = vector.load %arg9[%c0_21, %c0_22] : memref<1x128xf32, #tpu.memory_space<vmem>>, vector<1x128xf32>
    tpu.vector_store %arg9[%c0_21, %c0_22], %35 {strides = array<i32>} : memref<1x128xf32, #tpu.memory_space<vmem>>, vector<1x128xf32>,
    %c0_23 = arith.constant 0 : index
    %c0_24 = arith.constant 0 : index
    %37 = vector.load %arg7[%c0_23, %c0_24] : memref<1x128xf32, #tpu.memory_space<vmem>>, vector<1x128xf32>
    %cst_25 = arith.constant dense<0xFF800000> : vector<128xf32>
    %38 = vector.multi_reduction <maximumf>, %18, %cst_25 [0] : vector<384x128xf32> to vector<128xf32>
    %39 = vector.shape_cast %38 : vector<128xf32> to vector<1x128xf32>
    %40 = arith.maximumf %37, %39 : vector<1x128xf32>
    %c0_26 = arith.constant 0 : index
    %c0_27 = arith.constant 0 : index
    %41 = vector.load %arg8[%c0_26, %c0_27] : memref<1x128xf32, #tpu.memory_space<vmem>>, vector<1x128xf32>
    %42 = arith.subf %37, %40 : vector<1x128xf32>
    %43 = math.exp %42 : vector<1x128xf32>
    %44 = arith.mulf %41, %43 : vector<1x128xf32>
    %45 = vector.broadcast %40 : vector<1x128xf32> to vector<384x128xf32>
    %46 = arith.subf %18, %45 : vector<384x128xf32>
    %47 = math.exp %46 : vector<384x128xf32>
    %cst_28 = arith.constant dense<0.000000e+00> : vector<128xf32>
    %48 = vector.multi_reduction <add>, %47, %cst_28 [0] : vector<384x128xf32> to vector<128xf32>
    %49 = vector.shape_cast %48 : vector<128xf32> to vector<1x128xf32>
    %50 = arith.addf %44, %49 : vector<1x128xf32>
    %c0_29 = arith.constant 0 : index
    %c0_30 = arith.constant 0 : index
    %51 = vector.load %arg8[%c0_29, %c0_30] : memref<1x128xf32, #tpu.memory_space<vmem>>, vector<1x128xf32>
    tpu.vector_store %arg8[%c0_29, %c0_30], %50 {strides = array<i32>} : memref<1x128xf32, #tpu.memory_space<vmem>>, vector<1x128xf32>,
    %c0_31 = arith.constant 0 : index
    %c0_32 = arith.constant 0 : index
    %52 = vector.load %arg7[%c0_31, %c0_32] : memref<1x128xf32, #tpu.memory_space<vmem>>, vector<1x128xf32>
    tpu.vector_store %arg7[%c0_31, %c0_32], %40 {strides = array<i32>} : memref<1x128xf32, #tpu.memory_space<vmem>>, vector<1x128xf32>,
    %c0_i32_33 = arith.constant 0 : i32
    %53 = arith.cmpi eq, %arg1, %c0_i32_33 : i32
    %54 = arith.extui %53 : i1 to i32
    %c0_i32_34 = arith.constant 0 : i32
    %55 = arith.cmpi ne, %54, %c0_i32_34 : i32
    scf.if %55 {
      %c0_35 = arith.constant 0 : index
      %c0_36 = arith.constant 0 : index
      %56 = vector.load %arg7[%c0_35, %c0_36] : memref<1x128xf32, #tpu.memory_space<vmem>>, vector<1x128xf32>
      %c0_37 = arith.constant 0 : index
      %c0_38 = arith.constant 0 : index
      %57 = vector.load %arg8[%c0_37, %c0_38] : memref<1x128xf32, #tpu.memory_space<vmem>>, vector<1x128xf32>
      %58 = math.log %57 : vector<1x128xf32>
      %59 = arith.addf %56, %58 : vector<1x128xf32>
      %c0_39 = arith.constant 0 : index
      %c0_40 = arith.constant 0 : index
      %60 = vector.load %arg10[%c0_39, %c0_40] : memref<1x128xf32, #tpu.memory_space<vmem>>, vector<1x128xf32>
      %cst_41 = arith.constant 0.899999976 : f32
      %61 = vector.broadcast %cst_41 : f32 to vector<1x128xf32>
      %62 = arith.mulf %61, %60 : vector<1x128xf32>
      %63 = arith.subf %59, %62 : vector<1x128xf32>
      %c0_42 = arith.constant 0 : index
      %c0_43 = arith.constant 0 : index
      %64 = vector.load %arg9[%c0_42, %c0_43] : memref<1x128xf32, #tpu.memory_space<vmem>>, vector<1x128xf32>
      %cst_44 = arith.constant 3.125000e-04 : f32
      %65 = vector.broadcast %cst_44 : f32 to vector<1x128xf32>
      %66 = arith.mulf %65, %64 : vector<1x128xf32>
      %67 = arith.subf %63, %66 : vector<1x128xf32>
      %cst_45 = arith.constant 9.99999974E-5 : f32
      %68 = vector.broadcast %cst_45 : f32 to vector<1x128xf32>
      %69 = arith.mulf %68, %59 : vector<1x128xf32>
      %70 = arith.mulf %69, %59 : vector<1x128xf32>
      %71 = arith.addf %67, %70 : vector<1x128xf32>
      %c-100_i32 = arith.constant -100 : i32
      %72 = vector.broadcast %c-100_i32 : i32 to vector<1x128xi32>
      %73 = arith.cmpi ne, %14, %72 : vector<1x128xi32>
      %cst_46 = arith.constant 0.000000e+00 : f32
      %74 = vector.broadcast %cst_46 : f32 to vector<1x128xf32>
      %75 = arith.select %73, %71, %74 : vector<1x128xi1>, vector<1x128xf32>
      %76 = vector.shape_cast %75 : vector<1x128xf32> to vector<1x1x128xf32>
      %c0_47 = arith.constant 0 : index
      %c0_48 = arith.constant 0 : index
      %c0_49 = arith.constant 0 : index
      %77 = vector.load %arg6[%c0_47, %c0_48, %c0_49] : memref<1x1x128xf32, #tpu.memory_space<vmem>>, vector<1x1x128xf32>
      tpu.vector_store %arg6[%c0_47, %c0_48, %c0_49], %76 {strides = array<i32>} : memref<1x1x128xf32, #tpu.memory_space<vmem>>, vector<1x1x128xf32>,
    } else {
    }
    return
  }
  func.func @transform_0(%arg0: i32, %arg1: i32) -> (i32, i32) {
    %c0_i32 = arith.constant 0 : i32
    %c0_i32_0 = arith.constant 0 : i32
    return %arg0, %c0_i32 : i32, i32
  }
  func.func @transform_1(%arg0: i32, %arg1: i32) -> (i32, i32) {
    %c0_i32 = arith.constant 0 : i32
    %c0_i32_0 = arith.constant 0 : i32
    return %arg1, %c0_i32 : i32, i32
  }
  func.func @transform_2(%arg0: i32, %arg1: i32) -> (i32, i32) {
    %c0_i32 = arith.constant 0 : i32
    %c0_i32_0 = arith.constant 0 : i32
    return %arg1, %c0_i32 : i32, i32
  }
  func.func @transform_3(%arg0: i32, %arg1: i32) -> (i32, i32, i32) {
    %c0_i32 = arith.constant 0 : i32
    %c0_i32_0 = arith.constant 0 : i32
    %c0_i32_1 = arith.constant 0 : i32
    return %arg0, %c0_i32, %c0_i32_0 : i32, i32, i32
  }
  func.func @transform_4(%arg0: i32, %arg1: i32) -> (i32, i32, i32) {
    %c0_i32 = arith.constant 0 : i32
    %c0_i32_0 = arith.constant 0 : i32
    %c0_i32_1 = arith.constant 0 : i32
    return %arg0, %c0_i32, %c0_i32_0 : i32, i32, i32
  }
}

</mosaic_0001>

<bundles_post_ra>
// kernel: tpu_custom_call.1
= control target key start
LH: loop header
LB: loop body
LE: loop exit
PB: predicated region body
PF: predicated region fallthrough
CT: control target
= control target key end

     0   :  { %vm378_vm0 = vcmask 523264   ;;  %v1716_v1 = vmov 0   ;;  %s2837_s0 = inlined_call_operand.vmem [shape: f32[128,64], index: 0, kind: input, shape index: {}]   ;;  %s2838_s1 = inlined_call_operand.vmem [shape: f32[384,64], index: 1, kind: input, shape index: {}]   ;;  %s2839_s2 = inlined_call_operand.vmem [shape: f32[384,1], index: 2, kind: input, shape index: {}]   ;;  %s2840_s3 = inlined_call_operand.vmem [shape: s32[1,1,128], index: 3, kind: input, shape index: {}]   ;;  %s2841_s4 = inlined_call_operand.hbm [shape: f32[1,1,128], index: 4, kind: output, shape index: {}]  }
   0x1   :  { %v89_v0 = vld [vmem:[%s2837_s0 + $0x78] sm:$0xff]  ;;  %1602 = vset.pattern.permute.xlu2 %v1716_v1  ;;  %1601 = vset.pattern.permute.xlu1 %v1716_v1  ;;  %v94_v2 = vld [vmem:[%s2839_s2 + $0x20] sm:$0xff]  ;;  %v92_v3 = vld [vmem:[%s2839_s2 + $0x10] sm:$0xff] }
   0x2   :  { %1600 = vset.pattern.permute.xlu0 %v1716_v1  ;;  %1484 = vmatpush.xpose.msk.msra.mxu0 %vm378_vm0, %v89_v0  ;;  %v90_v4 = vld [vmem:[%s2839_s2] sm:$0xff]  ;;  %v88_v5 = vld [vmem:[%s2837_s0 + $0x70] sm:$0xff]  ;;  %v87_v6 = vld [vmem:[%s2837_s0 + $0x68] sm:$0xff] }
   0x3   :  { %1548 = vmatpush.xpose.msk.msra.mxu1 %vm378_vm0, %v89_v0  ;;  %1549 = vmatpush.xpose.msk.msra.mxu2 %vm378_vm0, %v89_v0 }
   0x4   :  { %1550 = vmatpush.xpose.msk.msra.mxu3 %vm378_vm0, %v89_v0  ;;  %160 = vperm.xlu2 %1602, %v94_v2  }
   0x5   :  { %150 = vperm.xlu1 %1601, %v92_v3   ;;  %140 = vperm.xlu0 %1600, %v90_v4  }
   0x6   :  { %1485 = vmatpush.xpose.msk.msra.mxu0 %vm378_vm0, %v88_v5 }
   0x7   :  { %1551 = vmatpush.xpose.msk.msra.mxu1 %vm378_vm0, %v88_v5  ;;  %1552 = vmatpush.xpose.msk.msra.mxu2 %vm378_vm0, %v88_v5 }
   0x8   :  { %1553 = vmatpush.xpose.msk.msra.mxu3 %vm378_vm0, %v88_v5 }
   0x9   :  { %9 = vsyncpa [#allocation7], 0  ;;  %v95_v7 = vld [vmem:[%s2839_s2 + $0x28] sm:$0xff]  ;;  %v93_v8 = vld [vmem:[%s2839_s2 + $0x18] sm:$0xff]  ;;  %s1719_s27 = smov [#allocation6]   ;;  %s1475_s30 = sshll.u32 %s2841_s4, 4  ;;  %s1476_s30 = int_to_ptr.hbm [resolvable:$true] %s1475_s30 }
   0xa   :  { %1486 = vmatpush.xpose.msk.msra.mxu0 %vm378_vm0, %v87_v6  ;;  %v91_v9 = vld [vmem:[%s2839_s2 + $0x8] sm:$0xff]  ;;  %v86_v10 = vld [vmem:[%s2837_s0 + $0x60] sm:$0xff]  ;;  %v85_v11 = vld [vmem:[%s2837_s0 + $0x58] sm:$0xff] }
   0xb   :  { %1554 = vmatpush.xpose.msk.msra.mxu1 %vm378_vm0, %v87_v6  ;;  %1555 = vmatpush.xpose.msk.msra.mxu2 %vm378_vm0, %v87_v6  ;;  %v98_v12 = vld [vmem:[%s2839_s2 + $0x40] sm:$0xff]  ;;  %v97_v13 = vld [vmem:[%s2839_s2 + $0x38] sm:$0xff]  ;;  %v96_v14 = vld [vmem:[%s2839_s2 + $0x30] sm:$0xff] }
   0xc   :  { %1556 = vmatpush.xpose.msk.msra.mxu3 %vm378_vm0, %v87_v6  ;;  %165 = vperm.xlu2 %1602, %v95_v7   ;;  %v84_v15 = vld [vmem:[%s2837_s0 + $0x50] sm:$0xff]  ;;  %v83_v16 = vld [vmem:[%s2837_s0 + $0x48] sm:$0xff]  ;;  %v101_v17 = vld [vmem:[%s2839_s2 + $0x58] sm:$0xff] }
   0xd   :  { %155 = vperm.xlu1 %1601, %v93_v8   ;;  %145 = vperm.xlu0 %1600, %v91_v9   ;;  %v100_v18 = vld [vmem:[%s2839_s2 + $0x50] sm:$0xff]  ;;  %v99_v19 = vld [vmem:[%s2839_s2 + $0x48] sm:$0xff]  ;;  %v82_v20 = vld [vmem:[%s2837_s0 + $0x40] sm:$0xff] }
   0xe   :  { %1487 = vmatpush.xpose.msk.msra.mxu0 %vm378_vm0, %v86_v10  ;;  %v81_v21 = vld [vmem:[%s2837_s0 + $0x38] sm:$0xff]  ;;  %v104_v22 = vld [vmem:[%s2839_s2 + $0x70] sm:$0xff]  ;;  %v103_v23 = vld [vmem:[%s2839_s2 + $0x68] sm:$0xff] }
   0xf   :  { %1557 = vmatpush.xpose.msk.msra.mxu1 %vm378_vm0, %v86_v10  ;;  %1558 = vmatpush.xpose.msk.msra.mxu2 %vm378_vm0, %v86_v10  ;;  %v102_v24 = vld [vmem:[%s2839_s2 + $0x60] sm:$0xff]  ;;  %v80_v25 = vld [vmem:[%s2837_s0 + $0x30] sm:$0xff]  ;;  %v79_v26 = vld [vmem:[%s2837_s0 + $0x28] sm:$0xff] }
  0x10   :  { %1559 = vmatpush.xpose.msk.msra.mxu3 %vm378_vm0, %v86_v10  ;;  %v107_v27 = vld [vmem:[%s2839_s2 + $0x88] sm:$0xff]  ;;  %v106_v28 = vld [vmem:[%s2839_s2 + $0x80] sm:$0xff]  ;;  %v105_v29 = vld [vmem:[%s2839_s2 + $0x78] sm:$0xff] }
  0x11   :  { %v78_v30 = vld [vmem:[%s2837_s0 + $0x20] sm:$0xff]  ;;  %v77_v31 = vld [vmem:[%s2837_s0 + $0x18] sm:$0xff]  ;;  %v108_v34 = vld [vmem:[%s2839_s2 + $0x90] sm:$0xff] }
  0x12   :  { %1488 = vmatpush.xpose.msk.msra.mxu0 %vm378_vm0, %v85_v11  ;;  %v110_v32 = vld [vmem:[%s2839_s2 + $0xa0] sm:$0xff]  ;;  %v109_v33 = vld [vmem:[%s2839_s2 + $0x98] sm:$0xff]  ;;  %v76_v35 = vld [vmem:[%s2837_s0 + $0x10] sm:$0xff] }
  0x13   :  { %1560 = vmatpush.xpose.msk.msra.mxu1 %vm378_vm0, %v85_v11  ;;  %1561 = vmatpush.xpose.msk.msra.mxu2 %vm378_vm0, %v85_v11  ;;  %v75_v36 = vld [vmem:[%s2837_s0 + $0x8] sm:$0xff]  ;;  %v113_v37 = vld [vmem:[%s2839_s2 + $0xb8] sm:$0xff]  ;;  %v112_v38 = vld [vmem:[%s2839_s2 + $0xb0] sm:$0xff] }
  0x14   :  { %1562 = vmatpush.xpose.msk.msra.mxu3 %vm378_vm0, %v85_v11  ;;  %180 = vperm.xlu2 %1602, %v98_v12   ;;  %v111_v39 = vld [vmem:[%s2839_s2 + $0xa8] sm:$0xff]  ;;  %v74_v40 = vld [vmem:[%s2837_s0] sm:$0xff]  ;;  %v116_v45 = vld [vmem:[%s2839_s2 + $0xd0] sm:$0xff] }
  0x15   :  { %175 = vperm.xlu1 %1601, %v97_v13   ;;  %170 = vperm.xlu0 %1600, %v96_v14   ;;  %v26_v41 = vld [vmem:[%s2838_s1] sm:$0xff]  ;;  %v115_v46 = vld [vmem:[%s2839_s2 + $0xc8] sm:$0xff]  ;;  %v117_v54 = vld [vmem:[%s2839_s2 + $0xd8] sm:$0xff] }
  0x16   :  { %1489 = vmatpush.xpose.msk.msra.mxu0 %vm378_vm0, %v84_v15  ;;  %v38_v42 = vld [vmem:[%s2838_s1 + $0x60] sm:$0xff]  ;;  %v27_v48 = vld [vmem:[%s2838_s1 + $0x8] sm:$0xff]  ;;  %v28_v55 = vld [vmem:[%s2838_s1 + $0x10] sm:$0xff] }
  0x17   :  { %1563 = vmatpush.xpose.msk.msra.mxu1 %vm378_vm0, %v84_v15  ;;  %1564 = vmatpush.xpose.msk.msra.mxu2 %vm378_vm0, %v84_v15  ;;  %v50_v43 = vld [vmem:[%s2838_s1 + $0xc0] sm:$0xff]  ;;  %v39_v49 = vld [vmem:[%s2838_s1 + $0x68] sm:$0xff]  ;;  %v40_v56 = vld [vmem:[%s2838_s1 + $0x70] sm:$0xff] }
  0x18   :  { %1565 = vmatpush.xpose.msk.msra.mxu3 %vm378_vm0, %v84_v15  ;;  %v62_v44 = vld [vmem:[%s2838_s1 + $0x120] sm:$0xff]  ;;  %v51_v50 = vld [vmem:[%s2838_s1 + $0xc8] sm:$0xff]  ;;  %v52_v57 = vld [vmem:[%s2838_s1 + $0xd0] sm:$0xff] }
  0x19   :  { %v114_v47 = vld [vmem:[%s2839_s2 + $0xc0] sm:$0xff]  ;;  %v63_v51 = vld [vmem:[%s2838_s1 + $0x128] sm:$0xff]  ;;  %v64_v58 = vld [vmem:[%s2838_s1 + $0x130] sm:$0xff] }
  0x1a   :  { %1490 = vmatpush.xpose.msk.msra.mxu0 %vm378_vm0, %v83_v16  ;;  %v119_v52 = vld [vmem:[%s2839_s2 + $0xe8] sm:$0xff]  ;;  %v118_v53 = vld [vmem:[%s2839_s2 + $0xe0] sm:$0xff]  ;;  %v121_v60 = vld [vmem:[%s2839_s2 + $0xf8] sm:$0xff] }
  0x1b   :  { %1566 = vmatpush.xpose.msk.msra.mxu1 %vm378_vm0, %v83_v16  ;;  %1567 = vmatpush.xpose.msk.msra.mxu2 %vm378_vm0, %v83_v16  ;;  %v122_v59 = vld [vmem:[%s2839_s2 + $0x100] sm:$0xff]  ;;  %v120_v61 = vld [vmem:[%s2839_s2 + $0xf0] sm:$0xff]  ;;  %v29_v62 = vld [vmem:[%s2838_s1 + $0x18] sm:$0xff] }
  0x1c   :  { %1568 = vmatpush.xpose.msk.msra.mxu3 %vm378_vm0, %v83_v16  ;;  %195 = vperm.xlu2 %1602, %v101_v17   ;;  %v41_v63 = vld [vmem:[%s2838_s1 + $0x78] sm:$0xff]  ;;  %v124_v3 = vld [vmem:[%s2839_s2 + $0x110] sm:$0xff]  ;;  %v123_v4 = vld [vmem:[%s2839_s2 + $0x108] sm:$0xff] }
  0x1d   :  { %190 = vperm.xlu1 %1601, %v100_v18   ;;  %185 = vperm.xlu0 %1600, %v99_v19   ;;  %v53_v0 = vld [vmem:[%s2838_s1 + $0xd8] sm:$0xff]  ;;  %v30_v5 = vld [vmem:[%s2838_s1 + $0x20] sm:$0xff]  ;;  %v128_v9 = vld [vmem:[%s2839_s2 + $0x130] sm:$0xff] }
  0x1e   :  { %1491 = vmatpush.xpose.msk.msra.mxu0 %vm378_vm0, %v82_v20  ;;  %v65_v1 = vld [vmem:[%s2838_s1 + $0x138] sm:$0xff]  ;;  %v42_v6 = vld [vmem:[%s2838_s1 + $0x80] sm:$0xff]  ;;  %v127_v10 = vld [vmem:[%s2839_s2 + $0x128] sm:$0xff] }
  0x1f   :  { %1569 = vmatpush.xpose.msk.msra.mxu1 %vm378_vm0, %v82_v20  ;;  %1570 = vmatpush.xpose.msk.msra.mxu2 %vm378_vm0, %v82_v20  ;;  %v125_v2 = vld [vmem:[%s2839_s2 + $0x118] sm:$0xff]  ;;  %v54_v7 = vld [vmem:[%s2838_s1 + $0xe0] sm:$0xff]  ;;  %v31_v12 = vld [vmem:[%s2838_s1 + $0x28] sm:$0xff] }
  0x20   :  { %1571 = vmatpush.xpose.msk.msra.mxu3 %vm378_vm0, %v82_v20  ;;  %v66_v8 = vld [vmem:[%s2838_s1 + $0x140] sm:$0xff]  ;;  %v43_v13 = vld [vmem:[%s2838_s1 + $0x88] sm:$0xff]  ;;  %v129_v18 = vld [vmem:[%s2839_s2 + $0x138] sm:$0xff] }
  0x21   :  { %v126_v11 = vld [vmem:[%s2839_s2 + $0x120] sm:$0xff]  ;;  %v55_v14 = vld [vmem:[%s2838_s1 + $0xe8] sm:$0xff]  ;;  %v32_v19 = vld [vmem:[%s2838_s1 + $0x30] sm:$0xff] }
  0x22   :  { %1492 = vmatpush.xpose.msk.msra.mxu0 %vm378_vm0, %v81_v21  ;;  %v67_v15 = vld [vmem:[%s2838_s1 + $0x148] sm:$0xff]  ;;  %v130_v17 = vld [vmem:[%s2839_s2 + $0x140] sm:$0xff]  ;;  %v44_v20 = vld [vmem:[%s2838_s1 + $0x90] sm:$0xff] }
  0x23   :  { %1572 = vmatpush.xpose.msk.msra.mxu1 %vm378_vm0, %v81_v21  ;;  %1573 = vmatpush.xpose.msk.msra.mxu2 %vm378_vm0, %v81_v21  ;;  %v131_v16 = vld [vmem:[%s2839_s2 + $0x148] sm:$0xff] }
  0x24   :  { %1574 = vmatpush.xpose.msk.msra.mxu3 %vm378_vm0, %v81_v21  ;;  %210 = vperm.xlu2 %1602, %v104_v22   ;;  %v56_v21 = vld [vmem:[%s2838_s1 + $0xf0] sm:$0xff] }
  0x25   :  { %205 = vperm.xlu1 %1601, %v103_v23   ;;  %200 = vperm.xlu0 %1600, %v102_v24   ;;  %v68_v22 = vld [vmem:[%s2838_s1 + $0x150] sm:$0xff]  ;;  %v134_v23 = vld [vmem:[%s2839_s2 + $0x160] sm:$0xff]  ;;  %v133_v24 = vld [vmem:[%s2839_s2 + $0x158] sm:$0xff] }
  0x26   :  { %1493 = vmatpush.xpose.msk.msra.mxu0 %vm378_vm0, %v80_v25 }
  0x27   :  { %1575 = vmatpush.xpose.msk.msra.mxu1 %vm378_vm0, %v80_v25  ;;  %1576 = vmatpush.xpose.msk.msra.mxu2 %vm378_vm0, %v80_v25 }
  0x28   :  { %1577 = vmatpush.xpose.msk.msra.mxu3 %vm378_vm0, %v80_v25  ;;  %v132_v25 = vld [vmem:[%s2839_s2 + $0x150] sm:$0xff] }
  0x2a   :  { %1494 = vmatpush.xpose.msk.msra.mxu0 %vm378_vm0, %v79_v26 }
  0x2b   :  { %1578 = vmatpush.xpose.msk.msra.mxu1 %vm378_vm0, %v79_v26  ;;  %1579 = vmatpush.xpose.msk.msra.mxu2 %vm378_vm0, %v79_v26 }
  0x2c   :  { %1580 = vmatpush.xpose.msk.msra.mxu3 %vm378_vm0, %v79_v26  ;;  %225 = vperm.xlu2 %1602, %v107_v27   ;;  %v33_v26 = vld [vmem:[%s2838_s1 + $0x38] sm:$0xff] }
  0x2d   :  { %220 = vperm.xlu1 %1601, %v106_v28   ;;  %215 = vperm.xlu0 %1600, %v105_v29   ;;  %v45_v27 = vld [vmem:[%s2838_s1 + $0x98] sm:$0xff] }
  0x2e   :  { %1495 = vmatpush.xpose.msk.msra.mxu0 %vm378_vm0, %v78_v30  ;;  %v57_v28 = vld [vmem:[%s2838_s1 + $0xf8] sm:$0xff] }
  0x2f   :  { %1581 = vmatpush.xpose.msk.msra.mxu1 %vm378_vm0, %v78_v30  ;;  %1582 = vmatpush.xpose.msk.msra.mxu2 %vm378_vm0, %v78_v30  ;;  %v69_v29 = vld [vmem:[%s2838_s1 + $0x158] sm:$0xff] }
  0x30   :  { %1583 = vmatpush.xpose.msk.msra.mxu3 %vm378_vm0, %v78_v30  ;;  %v137_v30 = vld [vmem:[%s2839_s2 + $0x178] sm:$0xff] }
  0x32   :  { %1496 = vmatpush.xpose.msk.msra.mxu0 %vm378_vm0, %v77_v31 }
  0x33   :  { %1584 = vmatpush.xpose.msk.msra.mxu1 %vm378_vm0, %v77_v31  ;;  %1585 = vmatpush.xpose.msk.msra.mxu2 %vm378_vm0, %v77_v31 }
  0x34   :  { %1586 = vmatpush.xpose.msk.msra.mxu3 %vm378_vm0, %v77_v31  ;;  %240 = vperm.xlu2 %1602, %v110_v32   ;;  %v136_v31 = vld [vmem:[%s2839_s2 + $0x170] sm:$0xff]  ;;  %v135_v32 = vld [vmem:[%s2839_s2 + $0x168] sm:$0xff]  ;;  %s1473_s2 = sshll.u32 %s1719_s27, 4  ;;  %s1474_s2 = int_to_ptr.vmem [resolvable:$true] %s1473_s2 }
  0x35   :  { %235 = vperm.xlu1 %1601, %v109_v33   ;;  %230 = vperm.xlu0 %1600, %v108_v34   ;;  %v34_v33 = vld [vmem:[%s2838_s1 + $0x40] sm:$0xff] }
  0x36   :  { %1497 = vmatpush.xpose.msk.msra.mxu0 %vm378_vm0, %v76_v35  ;;  %v46_v34 = vld [vmem:[%s2838_s1 + $0xa0] sm:$0xff] }
  0x37   :  { %1587 = vmatpush.xpose.msk.msra.mxu1 %vm378_vm0, %v76_v35  ;;  %1588 = vmatpush.xpose.msk.msra.mxu2 %vm378_vm0, %v76_v35 }
  0x38   :  { %1589 = vmatpush.xpose.msk.msra.mxu3 %vm378_vm0, %v76_v35  ;;  %v58_v35 = vld [vmem:[%s2838_s1 + $0x100] sm:$0xff] }
  0x3a   :  { %1498 = vmatpush.xpose.msk.msra.mxu0 %vm378_vm0, %v75_v36 }
  0x3b   :  { %1590 = vmatpush.xpose.msk.msra.mxu1 %vm378_vm0, %v75_v36  ;;  %1591 = vmatpush.xpose.msk.msra.mxu2 %vm378_vm0, %v75_v36 }
  0x3c   :  { %1592 = vmatpush.xpose.msk.msra.mxu3 %vm378_vm0, %v75_v36  ;;  %255 = vperm.xlu2 %1602, %v113_v37   ;;  %v70_v36 = vld [vmem:[%s2838_s1 + $0x160] sm:$0xff]  ;;  %v35_v37 = vld [vmem:[%s2838_s1 + $0x48] sm:$0xff] }
  0x3d   :  { %250 = vperm.xlu1 %1601, %v112_v38   ;;  %245 = vperm.xlu0 %1600, %v111_v39   ;;  %v47_v38 = vld [vmem:[%s2838_s1 + $0xa8] sm:$0xff] }
  0x3e   :  { %1499 = vmatpush.xpose.msk.msra.mxu0 %vm378_vm0, %v74_v40  ;;  %v59_v39 = vld [vmem:[%s2838_s1 + $0x108] sm:$0xff] }
  0x3f   :  { %1593 = vmatpush.xpose.msk.msra.mxu1 %vm378_vm0, %v74_v40  ;;  %1594 = vmatpush.xpose.msk.msra.mxu2 %vm378_vm0, %v74_v40 }
  0x40   :  { %1595 = vmatpush.xpose.msk.msra.mxu3 %vm378_vm0, %v74_v40  ;;  %v71_v40 = vld [vmem:[%s2838_s1 + $0x168] sm:$0xff] }
  0x41   :  { %1500 = vmatmul.msk.f32.vlgmr.msra.gmra.mxu0 %vm378_vm0, %v26_v41  ;;  %v36_v41 = vld [vmem:[%s2838_s1 + $0x50] sm:$0xff] }
  0x42   :  { %1512 = vmatmul.msk.f32.vlgmr.msra.gmra.mxu1 %vm378_vm0, %v38_v42  ;;  %1524 = vmatmul.msk.f32.vlgmr.msra.gmra.mxu2 %vm378_vm0, %v50_v43  ;;  %v48_v42 = vld [vmem:[%s2838_s1 + $0xb0] sm:$0xff] }
  0x43   :  { %1536 = vmatmul.msk.f32.vlgmr.msra.gmra.mxu3 %vm378_vm0, %v62_v44  ;;  %v60_v43 = vld [vmem:[%s2838_s1 + $0x110] sm:$0xff] }
  0x44   :  { %270 = vperm.xlu2 %1602, %v116_v45   ;;  %v72_v44 = vld [vmem:[%s2838_s1 + $0x170] sm:$0xff]  ;;  %v37_v45 = vld [vmem:[%s2838_s1 + $0x58] sm:$0xff] }
  0x45   :  { %265 = vperm.xlu1 %1601, %v115_v46   ;;  %260 = vperm.xlu0 %1600, %v114_v47   ;;  %v49_v47 = vld [vmem:[%s2838_s1 + $0xb8] sm:$0xff] }
  0x49   :  { %1501 = vmatmul.msk.f32.gmra.mxu0 %vm378_vm0, %v27_v48  ;;  %v61_v48 = vld [vmem:[%s2838_s1 + $0x118] sm:$0xff] }
  0x4a   :  { %1513 = vmatmul.msk.f32.gmra.mxu1 %vm378_vm0, %v39_v49  ;;  %1525 = vmatmul.msk.f32.gmra.mxu2 %vm378_vm0, %v51_v50  ;;  %v73_v49 = vld [vmem:[%s2838_s1 + $0x178] sm:$0xff] }
  0x4b   :  { %1537 = vmatmul.msk.f32.gmra.mxu3 %vm378_vm0, %v63_v51 }
  0x4c   :  { %285 = vperm.xlu2 %1602, %v119_v52  }
  0x4d   :  { %280 = vperm.xlu1 %1601, %v118_v53   ;;  %275 = vperm.xlu0 %1600, %v117_v54  }
  0x51   :  { %1502 = vmatmul.msk.f32.gmra.mxu0 %vm378_vm0, %v28_v55 }
  0x52   :  { %1514 = vmatmul.msk.f32.gmra.mxu1 %vm378_vm0, %v40_v56  ;;  %1526 = vmatmul.msk.f32.gmra.mxu2 %vm378_vm0, %v52_v57 }
  0x53   :  { %1538 = vmatmul.msk.f32.gmra.mxu3 %vm378_vm0, %v64_v58 }
  0x54   :  { %300 = vperm.xlu2 %1602, %v122_v59  }
  0x55   :  { %295 = vperm.xlu1 %1601, %v121_v60   ;;  %290 = vperm.xlu0 %1600, %v120_v61   ;;  %v733_v61 = vlaneseq }
  0x59   :  { %1503 = vmatmul.msk.f32.gmra.mxu0 %vm378_vm0, %v29_v62 }
  0x5a   :  { %1515 = vmatmul.msk.f32.gmra.mxu1 %vm378_vm0, %v41_v63  ;;  %1527 = vmatmul.msk.f32.gmra.mxu2 %vm378_vm0, %v53_v0 }
  0x5b   :  { %1539 = vmatmul.msk.f32.gmra.mxu3 %vm378_vm0, %v65_v1  ;;  %v2215_v1 = vshrl.u32 %v733_v61, 7 }
  0x5c   :  { %315 = vperm.xlu2 %1602, %v125_v2  }
  0x5d   :  { %310 = vperm.xlu1 %1601, %v124_v3   ;;  %305 = vperm.xlu0 %1600, %v123_v4   ;;  %v2222_v3 = vld [vmem:[%s2840_s3] ss:$0 sm:$0xff]  ;;  %v735_v4 = vadd.s32 8, %v2215_v1 }
  0x5e   :  { %v2195_v53 = vpop.permute.xlu2 %160  ;;  %vm929_vm1 = vcmp.eq.s32.totalorder %v2215_v1, %v2222_v3 }
  0x5f   :  { %vm930_vm2 = vcmp.eq.s32.totalorder %v735_v4, %v2222_v3 }
  0x61   :  { %1504 = vmatmul.msk.f32.gmra.mxu0 %vm378_vm0, %v30_v5 }
  0x62   :  { %1516 = vmatmul.msk.f32.gmra.mxu1 %vm378_vm0, %v42_v6  ;;  %1528 = vmatmul.msk.f32.gmra.mxu2 %vm378_vm0, %v54_v7 }
  0x63   :  { %1540 = vmatmul.msk.f32.gmra.mxu3 %vm378_vm0, %v66_v8 }
  0x64   :  { %330 = vperm.xlu2 %1602, %v128_v9  }
  0x65   :  { %325 = vperm.xlu1 %1601, %v127_v10   ;;  %320 = vperm.xlu0 %1600, %v126_v11  }
  0x66   :  { %v2201_v56 = vpop.permute.xlu2 %165 }
  0x69   :  { %1505 = vmatmul.msk.f32.gmra.mxu0 %vm378_vm0, %v31_v12 }
  0x6a   :  { %1517 = vmatmul.msk.f32.gmra.mxu1 %vm378_vm0, %v43_v13  ;;  %1529 = vmatmul.msk.f32.gmra.mxu2 %vm378_vm0, %v55_v14 }
  0x6b   :  { %1541 = vmatmul.msk.f32.gmra.mxu3 %vm378_vm0, %v67_v15  ;;  %v736_v15 = vadd.s32 16, %v2215_v1 }
  0x6c   :  { %345 = vperm.xlu2 %1602, %v131_v16  }
  0x6d   :  { %340 = vperm.xlu1 %1601, %v130_v17   ;;  %335 = vperm.xlu0 %1600, %v129_v18   ;;  %vm931_vm3 = vcmp.eq.s32.totalorder %v736_v15, %v2222_v3 }
  0x6e   :  { %v2207_v59 = vpop.permute.xlu2 %180 }
  0x71   :  { %1506 = vmatmul.msk.f32.gmra.mxu0 %vm378_vm0, %v32_v19 }
  0x72   :  { %1518 = vmatmul.msk.f32.gmra.mxu1 %vm378_vm0, %v44_v20  ;;  %1530 = vmatmul.msk.f32.gmra.mxu2 %vm378_vm0, %v56_v21 }
  0x73   :  { %1542 = vmatmul.msk.f32.gmra.mxu3 %vm378_vm0, %v68_v22 }
  0x74   :  { %360 = vperm.xlu2 %1602, %v134_v23  }
  0x75   :  { %355 = vperm.xlu1 %1601, %v133_v24   ;;  %350 = vperm.xlu0 %1600, %v132_v25  }
  0x76   :  { %v2227_v6 = vpop.permute.xlu2 %195 }
  0x77   :  { %v141_v46 = vpop.permute.xlu0 %140  ;;  %v151_v50 = vpop.permute.xlu1 %150 }
  0x79   :  { %1507 = vmatmul.msk.f32.gmra.mxu0 %vm378_vm0, %v33_v26 }
  0x7a   :  { %1519 = vmatmul.msk.f32.gmra.mxu1 %vm378_vm0, %v45_v27  ;;  %1531 = vmatmul.msk.f32.gmra.mxu2 %vm378_vm0, %v57_v28 }
  0x7b   :  { %1543 = vmatmul.msk.f32.gmra.mxu3 %vm378_vm0, %v69_v29 }
  0x7c   :  { %375 = vperm.xlu2 %1602, %v137_v30  }
  0x7d   :  { %370 = vperm.xlu1 %1601, %v136_v31   ;;  %365 = vperm.xlu0 %1600, %v135_v32  }
  0x7e   :  { %v2250_v20 = vpop.permute.xlu2 %210 }
  0x7f   :  { %v146_v51 = vpop.permute.xlu0 %145  ;;  %v2193_v52 = vpop.permute.xlu1 %155 }
  0x81   :  { %1508 = vmatmul.msk.f32.gmra.mxu0 %vm378_vm0, %v34_v33 }
  0x82   :  { %1520 = vmatmul.msk.f32.gmra.mxu1 %vm378_vm0, %v46_v34  ;;  %1532 = vmatmul.msk.f32.gmra.mxu2 %vm378_vm0, %v58_v35 }
  0x83   :  { %1544 = vmatmul.msk.f32.gmra.mxu3 %vm378_vm0, %v70_v36 }
  0x86   :  { %v2264_v30 = vpop.permute.xlu2 %225 }
  0x87   :  { %v2197_v54 = vpop.permute.xlu0 %170  ;;  %v2199_v55 = vpop.permute.xlu1 %175 }
  0x89   :  { %1509 = vmatmul.msk.f32.gmra.mxu0 %vm378_vm0, %v35_v37 }
  0x8a   :  { %1521 = vmatmul.msk.f32.gmra.mxu1 %vm378_vm0, %v47_v38  ;;  %1533 = vmatmul.msk.f32.gmra.mxu2 %vm378_vm0, %v59_v39 }
  0x8b   :  { %1545 = vmatmul.msk.f32.gmra.mxu3 %vm378_vm0, %v71_v40 }
  0x8e   :  { %v2272_v36 = vpop.permute.xlu2 %240 }
  0x8f   :  { %v2203_v57 = vpop.permute.xlu0 %185  ;;  %v2205_v58 = vpop.permute.xlu1 %190 }
  0x91   :  { %1510 = vmatmul.msk.f32.gmra.mxu0 %vm378_vm0, %v36_v41 }
  0x92   :  { %1522 = vmatmul.msk.f32.gmra.mxu1 %vm378_vm0, %v48_v42  ;;  %1534 = vmatmul.msk.f32.gmra.mxu2 %vm378_vm0, %v60_v43 }
  0x93   :  { %1546 = vmatmul.msk.f32.gmra.mxu3 %vm378_vm0, %v72_v44 }
  0x96   :  { %v2284_v43 = vpop.permute.xlu2 %255 }
  0x97   :  { %v2209_v62 = vpop.permute.xlu0 %200  ;;  %v2217_v2 = vpop.permute.xlu1 %205 }
  0x99   :  { %1511 = vmatmul.msk.f32.gmra.mxu0 %vm378_vm0, %v37_v45 }
  0x9a   :  { %1523 = vmatmul.msk.f32.gmra.mxu1 %vm378_vm0, %v49_v47  ;;  %1535 = vmatmul.msk.f32.gmra.mxu2 %vm378_vm0, %v61_v48 }
  0x9b   :  { %1547 = vmatmul.msk.f32.gmra.mxu3 %vm378_vm0, %v73_v49  ;;  %v737_v49 = vadd.s32 24, %v2215_v1 }
  0x9d   :  { %vm932_vm4 = vcmp.eq.s32.totalorder %v737_v49, %v2222_v3 }
  0x9e   :  { %v2298_v61 = vpop.permute.xlu2 %270 }
  0x9f   :  { %v2234_v9 = vpop.permute.xlu0 %215  ;;  %v2243_v16 = vpop.permute.xlu1 %220 }
  0xa7   :  { %v2254_v22 = vpop.permute.xlu0 %230  ;;  %v2260_v27 = vpop.permute.xlu1 %235 }
  0xaf   :  { %v2266_v31 = vpop.permute.xlu0 %245  ;;  %v2270_v35 = vpop.permute.xlu1 %250 }
  0xb7   :  { %v2276_v38 = vpop.permute.xlu0 %260  ;;  %v2280_v41 = vpop.permute.xlu1 %265 }
  0xbe   :  { %v588_v60 = vpop.f32.mrf.mxu0 }
  0xbf   :  { %v2211_v63 = vadd.f32 %v588_v60, %v141_v46  ;;  %v2213_v0 = vpop.f32.mrf.mxu1  ;;  %v2288_v46 = vpop.permute.xlu0 %275 }
  0xc0   :  { %v2290_v47 = vpop.permute.xlu1 %280 }
  0xc1   :  { %2852 = vst [vmem:[#allocation9_spill] sm:$0xff] %v2211_v63  ;;  %v978_v11 = vsel %vm929_vm1, %v2211_v63, 0.0 }
  0xc5   :  { %v2225_v5 = vpop.f32.mrf.mxu2 }
  0xc6   :  { %v591_v7 = vpop.f32.mrf.mxu0 }
  0xc7   :  { %v2232_v8 = vpop.f32.mrf.mxu1  ;;  %v2236_v10 = vadd.f32 %v591_v7, %v146_v51  ;;  %v739_v7 = vadd.s32 40, %v2215_v1 }
  0xc9   :  { %v979_v12 = vsel %vm930_vm2, %v2236_v10, 0.0  ;;  %v1130_v13 = vadd.f32 %v2236_v10, %v2211_v63  ;;  %vm934_vm6 = vcmp.eq.s32.totalorder %v739_v7, %v2222_v3 }
  0xca   :  { %v1026_v14 = vadd.f32 %v979_v12, %v978_v11  ;;  %v2308_v12 = vpop.permute.xlu0 %290 }
  0xcd   :  { %v2245_v17 = vpop.f32.mrf.mxu2 }
  0xce   :  { %v594_v18 = vpop.f32.mrf.mxu0 }
  0xcf   :  { %v2248_v19 = vpop.f32.mrf.mxu1  ;;  %v2252_v21 = vadd.f32 %v594_v18, %v151_v50  ;;  %v738_v50 = vadd.s32 32, %v2215_v1 }
  0xd1   :  { %v980_v23 = vsel %vm931_vm3, %v2252_v21, 0.0  ;;  %v1131_v24 = vadd.f32 %v1130_v13, %v2252_v21  ;;  %vm933_vm5 = vcmp.eq.s32.totalorder %v738_v50, %v2222_v3  ;;  %v740_v13 = vadd.s32 48, %v2215_v1 }
  0xd2   :  { %v1027_v25 = vadd.f32 %v1026_v14, %v980_v23  ;;  %v2321_v23 = vpop.permute.xlu1 %295 }
  0xd3   :  { %2855 = vst [vmem:[#allocation12_spill] sm:$0xff] %v2321_v23  ;;  %vm935_vm7 = vcmp.eq.s32.totalorder %v740_v13, %v2222_v3  ;;  %v286_v13 = vpop.permute.xlu2 %285 }
  0xd5   :  { %v2258_v26 = vpop.f32.mrf.mxu2 }
  0xd6   :  { %v597_v28 = vpop.f32.mrf.mxu0 }
  0xd7   :  { %v2262_v29 = vpop.f32.mrf.mxu1  ;;  %v2301_v4 = vadd.f32 %v597_v28, %v2193_v52 }
  0xd9   :  { %v981_v14 = vsel %vm932_vm4, %v2301_v4, 0.0  ;;  %v1132_v18 = vadd.f32 %v1131_v24, %v2301_v4 }
  0xda   :  { %v1028_v49 = vadd.f32 %v1027_v25, %v981_v14  ;;  %v2339_v25 = vpop.f32.mrf.mxu3  ;;  %v2344_v14 = vadd.f32 %v2213_v0, %v2209_v62 }
  0xdd   :  { %v2268_v32 = vpop.f32.mrf.mxu2 }
  0xde   :  { %v600_v33 = vpop.f32.mrf.mxu0 }
  0xdf   :  { %v636_v34 = vpop.f32.mrf.mxu1  ;;  %v2306_v11 = vadd.f32 %v600_v33, %v2195_v53  ;;  %v741_v53 = vadd.s32 56, %v2215_v1 }
  0xe1   :  { %2853 = vst [vmem:[#allocation10_spill] sm:$0xff] %v2306_v11  ;;  %v982_v28 = vsel %vm933_vm5, %v2306_v11, 0.0  ;;  %v1133_v50 = vadd.f32 %v1132_v18, %v2306_v11  ;;  %v1186_v7 = vmax.f32 %v2211_v63, %v2306_v11  ;;  %vm936_vm8 = vcmp.eq.s32.totalorder %v741_v53, %v2222_v3 }
  0xe5   :  { %v2274_v37 = vpop.f32.mrf.mxu2 }
  0xe6   :  { %v603_v39 = vpop.f32.mrf.mxu0 }
  0xe7   :  { %v2278_v40 = vpop.f32.mrf.mxu1  ;;  %v2314_v15 = vadd.f32 %v603_v39, %v2201_v56  ;;  %v742_v39 = vadd.s32 64, %v2215_v1 }
  0xe9   :  { %v1134_v18 = vadd.f32 %v1133_v50, %v2314_v15  ;;  %vm937_vm9 = vcmp.eq.s32.totalorder %v742_v39, %v2222_v3  ;;  %v306_v50 = vpop.permute.xlu0 %305 }
  0xed   :  { %v2282_v42 = vpop.f32.mrf.mxu2 }
  0xee   :  { %v606_v44 = vpop.f32.mrf.mxu0 }
  0xef   :  { %v2286_v45 = vpop.f32.mrf.mxu1  ;;  %v2325_v33 = vadd.f32 %v606_v44, %v2197_v54  ;;  %v1029_v44 = vadd.f32 %v1028_v49, %v982_v28  ;;  %v2352_v28 = vadd.f32 %v636_v34, %v2243_v16  ;;  %v2365_v16 = vadd.f32 %v2225_v5, %v2276_v38  ;;  %v2379_v5 = vpop.permute.xlu1 %310 }
  0xf0   :  { %v2383_v38 = vadd.f32 %v2274_v37, %v2290_v47  ;;  %v746_v47 = vadd.s32 96, %v2215_v1 }
  0xf1   :  { %2856 = vst [vmem:[#allocation13_spill] sm:$0xff] %v2325_v33  ;;  %v984_v11 = vsel %vm935_vm7, %v2325_v33, 0.0  ;;  %v1135_v53 = vadd.f32 %v1134_v18, %v2325_v33 }
  0xf2   :  { %vm941_vm11 = vcmp.eq.s32.totalorder %v746_v47, %v2222_v3 }
  0xf5   :  { %v2292_v48 = vpop.f32.mrf.mxu2 }
  0xf6   :  { %v609_v51 = vpop.f32.mrf.mxu0 }
  0xf7   :  { %v2296_v60 = vpop.f32.mrf.mxu1  ;;  %v2334_v23 = vadd.f32 %v609_v51, %v2199_v55 }
  0xf9   :  { %v985_v49 = vsel %vm936_vm8, %v2334_v23, 0.0  ;;  %v1136_v63 = vadd.f32 %v1135_v53, %v2334_v23  ;;  %v1189_v47 = vmax.f32 %v2301_v4, %v2334_v23 }
  0xfd   :  { %v2316_v52 = vpop.f32.mrf.mxu2 }
  0xfe   :  { %2854 = vst [vmem:[#allocation11_spill] sm:$0xff] %v2316_v52  ;;  %v612_v56 = vpop.f32.mrf.mxu0  ;;  %v983_v52 = vsel %vm934_vm6, %v2314_v15, 0.0 }
  0xff   :  { %v648_v24 = vpop.f32.mrf.mxu1  ;;  %v2337_v54 = vadd.f32 %v612_v56, %v2207_v59  ;;  %v1030_v51 = vadd.f32 %v1029_v44, %v983_v52  ;;  %v743_v59 = vadd.s32 72, %v2215_v1 }
 0x100   :  { %v2360_v39 = vadd.f32 %v648_v24, %v2272_v36  ;;  %v2377_v24 = vadd.f32 %v2232_v8, %v2217_v2  ;;  %v2391_v2 = vadd.f32 %v2278_v40, %v2264_v30  ;;  %v2406_v30 = vadd.s32 112, %v2215_v1  ;;  %v321_v40 = vpop.permute.xlu0 %320 }
 0x101   :  { %2857 = vst [vmem:[#allocation14_spill] sm:$0xff] %v2337_v54  ;;  %v1190_v55 = vmax.f32 %v1186_v7, %v2337_v54  ;;  %v1031_v56 = vadd.f32 %v1030_v51, %v984_v11  ;;  %v986_v52 = vsel %vm937_vm9, %v2337_v54, 0.0  ;;  %vm938_vm10 = vcmp.eq.s32.totalorder %v743_v59, %v2222_v3 }
 0x102   :  { %v1187_v11 = vmax.f32 %v2236_v10, %v2314_v15  ;;  %vm943_vm14 = vcmp.eq.s32.totalorder %v2406_v30, %v2222_v3 }
 0x103   :  { %v1194_v62 = vmax.f32 %v1190_v55, %v2344_v14  ;;  %v1032_v34 = vadd.f32 %v1031_v56, %v985_v49  ;;  %v1137_v55 = vadd.f32 %v1136_v63, %v2337_v54 }
 0x105   :  { %v684_v0 = vpop.f32.mrf.mxu2  ;;  %v1198_v7 = vmax.f32 %v1194_v62, %v2352_v28  ;;  %v1033_v59 = vadd.f32 %v1032_v34, %v986_v52  ;;  %v699_v62 = vpop.f32.mrf.mxu3  ;;  %v2397_v34 = vadd.s32 104, %v2215_v1 }
 0x106   :  { %v615_v44 = vpop.f32.mrf.mxu0 }
 0x107   :  { %v651_v18 = vpop.f32.mrf.mxu1  ;;  %v1202_v51 = vmax.f32 %v1198_v7, %v2360_v39  ;;  %v2373_v36 = vadd.f32 %v615_v44, %v2203_v57  ;;  %v301_v7 = vpop.permute.xlu2 %300  ;;  %vm942_vm12 = vcmp.eq.s32.totalorder %v2397_v34, %v2222_v3 }
 0x108   :  { %v2399_v44 = vadd.f32 %v684_v0, %v301_v7  ;;  %v2424_v7 = vadd.f32 %v2339_v25, %v321_v40  ;;  %v745_v25 = vadd.s32 88, %v2215_v1 }
 0x109   :  { %v1206_v53 = vmax.f32 %v1202_v51, %v2365_v16  ;;  %v987_v63 = vsel %vm938_vm10, %v2373_v36, 0.0  ;;  %v1138_v49 = vadd.f32 %v1137_v55, %v2373_v36  ;;  %v1191_v57 = vmax.f32 %v1187_v11, %v2373_v36 }
 0x10a   :  { %v1034_v56 = vadd.f32 %v1033_v59, %v987_v63  ;;  %v2402_v11 = vadd.f32 %v651_v18, %v2266_v31  ;;  %v744_v59 = vadd.s32 80, %v2215_v1  ;;  %v1188_v18 = vmax.f32 %v2252_v21, %v2325_v33 }
 0x10b   :  { %v1210_v8 = vmax.f32 %v1206_v53, %v2383_v38  ;;  %v1195_v37 = vmax.f32 %v1191_v57, %v2377_v24  ;;  %v2411_v53 = vadd.f32 %v2245_v17, %v2280_v41  ;;  %v2427_v17 = vadd.s32 120, %v2215_v1 }
 0x10c   :  { %v2430_v41 = vadd.f32 %v2282_v42, %v286_v13  ;;  %vm939_vm13 = vcmp.eq.s32.totalorder %v744_v59, %v2222_v3  ;;  %v2454_v59 = vadd.f32 %v2286_v45, %v2254_v22  ;;  %vm940_vm0 = vcmp.eq.s32.totalorder %v745_v25, %v2222_v3 }
 0x10d   :  { %v687_v52 = vpop.f32.mrf.mxu2  ;;  %v1199_v55 = vmax.f32 %v1195_v37, %v2391_v2  ;;  %v1214_v63 = vmax.f32 %v1210_v8, %v2399_v44  ;;  %v2435_v8 = vadd.f32 %v2248_v19, %v2250_v20  ;;  %v326_v37 = vpop.permute.xlu1 %325  ;;  %v990_v19 = vsel %vm941_vm11, %v2344_v14, 0.0 }
 0x10e   :  { %v618_v51 = vpop.f32.mrf.mxu0  ;;  %v2443_v42 = vadd.f32 %v687_v52, %v306_v50  ;;  %v702_v20 = vpop.f32.mrf.mxu3  ;;  %v2459_v50 = vadd.f32 %v699_v62, %v326_v37  ;;  %vm944_vm15 = vcmp.eq.s32.totalorder %v2427_v17, %v2222_v3  ;;  %v1717_v62 = vmov -inf  }
 0x10f   :  { %v1203_v0 = vmax.f32 %v1199_v55, %v2402_v11  ;;  %v2416_v31 = vadd.f32 %v618_v51, %v2205_v58  ;;  %v654_v57 = vpop.f32.mrf.mxu1  ;;  %v1218_v40 = vmax.f32 %v1214_v63, %v2424_v7  ;;  %v2450_v51 = vadd.s32 128, %v2215_v1  ;;  %22 = vst [vmem:[#allocation2] sm:$0x1] %v1717_v62 }
 0x110   :  { %2858 = vst [vmem:[#allocation15_spill] sm:$0xff] %v2459_v50  ;;  %v992_v34 = vsel %vm943_vm14, %v2435_v8, 0.0 }
 0x111   :  { %v1207_v58 = vmax.f32 %v1203_v0, %v2411_v53  ;;  %v1192_v55 = vmax.f32 %v1188_v18, %v2416_v31  ;;  %v2457_v18 = vpop.permute.xlu2 %315  ;;  %v988_v63 = vsel %vm939_vm13, %v2416_v31, 0.0  ;;  %v1222_v37 = vmax.f32 %v1218_v40, -1e+30 }
 0x112   :  { %v1139_v54 = vadd.f32 %v1138_v49, %v2416_v31  ;;  %vm945_vm1 = vcmp.eq.s32.totalorder %v2450_v51, %v2222_v3 }
 0x113   :  { %v1211_v13 = vmax.f32 %v1207_v58, %v2430_v41  ;;  %v1196_v0 = vmax.f32 %v1192_v55, %v2435_v8  ;;  %v2468_v58 = vadd.f32 %v654_v57, %v2270_v35  ;;  %v2479_v35 = vadd.f32 %v2258_v26, %v2298_v61 }
 0x114   :  { %v2483_v57 = vadd.f32 %v2262_v29, %v2234_v9  ;;  %v2495_v26 = vadd.f32 %v2296_v60, %v2260_v27 }
 0x115   :  { %v1215_v52 = vmax.f32 %v1211_v13, %v2443_v42  ;;  %v1200_v22 = vmax.f32 %v1196_v0, %v2454_v59  ;;  %v690_v45 = vpop.f32.mrf.mxu2  ;;  %v1035_v0 = vadd.f32 %v1034_v56, %v988_v63  ;;  %v1226_v56 = vmax.f32 %v1222_v37, -1e+30 }
 0x116   :  { %v621_v55 = vpop.f32.mrf.mxu0 }
 0x117   :  { %v1219_v13 = vmax.f32 %v1215_v52, %v2459_v50  ;;  %v2475_v33 = vadd.f32 %v621_v55, %v2227_v6  ;;  %v1204_v25 = vmax.f32 %v1200_v22, %v2468_v58  ;;  %v2491_v6 = vadd.f32 %v2292_v48, %v2308_v12  ;;  %v657_v61 = vpop.f32.mrf.mxu1 }
 0x118   :  { %v991_v48 = vsel %vm942_vm12, %v2377_v24, 0.0  ;;  %v2505_v12 = vadd.f32 %v690_v45, %v2379_v5  ;;  %v2512_v37 = vadd.f32 %v657_v61, %v2284_v43  ;;  %v751_v5 = vadd.s32 136, %v2215_v1  ;;  %v2861_v61 = vld [vmem:[#allocation12_spill] sm:$0xff] }
 0x119   :  { %v1223_v62 = vmax.f32 %v1219_v13, -1e+30  ;;  %v989_v40 = vsel %vm940_vm0, %v2475_v33, 0.0  ;;  %v1140_v52 = vadd.f32 %v1139_v54, %v2475_v33  ;;  %v1193_v49 = vmax.f32 %v1189_v47, %v2475_v33  ;;  %v331_v45 = vpop.permute.xlu2 %330 }
 0x11a   :  { %v1208_v9 = vmax.f32 %v1204_v25, %v2479_v35  ;;  %v1036_v29 = vadd.f32 %v1035_v0, %v989_v40  ;;  %2859 = vst [vmem:[#allocation16_spill] sm:$0xff] %v2505_v12  ;;  %v705_v0 = vpop.f32.mrf.mxu3  ;;  %v2524_v25 = vadd.f32 %v2268_v32, %v2288_v46  ;;  %v2529_v30 = vadd.f32 %v702_v20, %v331_v45  ;;  %v2862_v32 = vld [vmem:[#allocation11_spill] sm:$0xff] }
 0x11b   :  { %v1227_v63 = vmax.f32 %v1223_v62, -1e+30  ;;  %v1141_v22 = vadd.f32 %v1140_v52, %v2344_v14  ;;  %v1197_v54 = vmax.f32 %v1193_v49, %v2483_v57  ;;  %v752_v52 = vadd.s32 144, %v2215_v1 }
 0x11c   :  { %v1212_v27 = vmax.f32 %v1208_v9, %v2491_v6  ;;  %v1037_v60 = vadd.f32 %v1036_v29, %v990_v19  ;;  %2860 = vst [vmem:[#allocation17_spill] sm:$0xff] %v2529_v30  ;;  %v993_v29 = vsel %vm944_vm15, %v2483_v57, 0.0  ;;  %v2538_v46 = vadd.f32 %v2862_v32, %v2861_v61 }
 0x11d   :  { %v2508_v47 = vmax.f32 %v1226_v56, %v1227_v63  ;;  %v1142_v55 = vadd.f32 %v1141_v22, %v2377_v24  ;;  %v1201_v13 = vmax.f32 %v1197_v54, %v2495_v26  ;;  %v693_v9 = vpop.f32.mrf.mxu2  ;;  %v336_v22 = vpop.permute.xlu0 %335  ;;  %v994_v20 = vsel %vm945_vm1, %v2352_v28, 0.0 }
 0x11e   :  { %v1038_v19 = vadd.f32 %v1037_v60, %v991_v48  ;;  %v1216_v43 = vmax.f32 %v1212_v27, %v2505_v12  ;;  %vm946_vm2 = vcmp.eq.s32.totalorder %v751_v5, %v2222_v3  ;;  %v753_v54 = vadd.s32 152, %v2215_v1 }
 0x11f   :  { %v1143_v62 = vadd.f32 %v1142_v55, %v2435_v8  ;;  %v1205_v40 = vmax.f32 %v1201_v13, %v2512_v37  ;;  %v2551_v60 = vadd.f32 %v693_v9, %v2457_v18  ;;  %vm947_vm3 = vcmp.eq.s32.totalorder %v752_v52, %v2222_v3 }
 0x120   :  { %v1039_v49 = vadd.f32 %v1038_v19, %v992_v34  ;;  %v1220_v48 = vmax.f32 %v1216_v43, %v2529_v30  ;;  %v754_v13 = vadd.s32 160, %v2215_v1  ;;  %v2556_v34 = vadd.f32 %v705_v0, %v336_v22 }
 0x121   :  { %v1144_v56 = vadd.f32 %v1143_v62, %v2483_v57  ;;  %v1209_v63 = vmax.f32 %v1205_v40, %v2524_v25  ;;  %2863 = vst [vmem:[#allocation12_spill] sm:$0xff] %v2551_v60  ;;  %v995_v5 = vsel %vm946_vm2, %v2391_v2, 0.0  ;;  %vm948_vm4 = vcmp.eq.s32.totalorder %v753_v54, %v2222_v3 }
 0x122   :  { %v1040_v17 = vadd.f32 %v1039_v49, %v993_v29  ;;  %v755_v18 = vadd.s32 168, %v2215_v1  ;;  %v996_v62 = vsel %vm947_vm3, %v2454_v59, 0.0  ;;  %v1224_v40 = vmax.f32 %v1220_v48, -1e+30  ;;  %v2566_v0 = vpop.f32.mrf.mxu3 }
 0x123   :  { %v1145_v27 = vadd.f32 %v1144_v56, %v2352_v28  ;;  %v1213_v55 = vmax.f32 %v1209_v63, %v2538_v46  ;;  %vm949_vm5 = vcmp.eq.s32.totalorder %v754_v13, %v2222_v3  ;;  %v756_v9 = vadd.s32 176, %v2215_v1 }
 0x124   :  { %v1041_v51 = vadd.f32 %v1040_v17, %v994_v20  ;;  %v997_v61 = vsel %vm948_vm4, %v2495_v26, 0.0  ;;  %vm950_vm6 = vcmp.eq.s32.totalorder %v755_v18, %v2222_v3  ;;  %v757_v63 = vadd.s32 184, %v2215_v1 }
 0x125   :  { %v1146_v19 = vadd.f32 %v1145_v27, %v2391_v2  ;;  %v1217_v45 = vmax.f32 %v1213_v55, %v2551_v60  ;;  %v998_v20 = vsel %vm949_vm5, %v2360_v39, 0.0  ;;  %v1228_v54 = vmax.f32 %v1224_v40, -1e+30 }
 0x126   :  { %v1042_v43 = vadd.f32 %v1041_v51, %v995_v5  ;;  %v758_v27 = vadd.s32 192, %v2215_v1  ;;  %vm951_vm7 = vcmp.eq.s32.totalorder %v756_v9, %v2222_v3  ;;  %v999_v13 = vsel %vm950_vm6, %v2402_v11, 0.0 }
 0x127   :  { %v1147_v52 = vadd.f32 %v1146_v19, %v2454_v59  ;;  %v1221_v49 = vmax.f32 %v1217_v45, %v2556_v34  ;;  %v759_v19 = vadd.s32 200, %v2215_v1  ;;  %vm952_vm8 = vcmp.eq.s32.totalorder %v757_v63, %v2222_v3 }
 0x128   :  { %v1043_v29 = vadd.f32 %v1042_v43, %v996_v62  ;;  %v1000_v18 = vsel %vm951_vm7, %v2468_v58, 0.0  ;;  %vm953_vm9 = vcmp.eq.s32.totalorder %v758_v27, %v2222_v3  ;;  %v760_v40 = vadd.s32 208, %v2215_v1 }
 0x129   :  { %v1148_v32 = vadd.f32 %v1147_v52, %v2495_v26  ;;  %v1225_v56 = vmax.f32 %v1221_v49, -1e+30  ;;  %v1001_v49 = vsel %vm952_vm8, %v2512_v37, 0.0  ;;  %vm954_vm10 = vcmp.eq.s32.totalorder %v759_v19, %v2222_v3 }
 0x12a   :  { %v1044_v22 = vadd.f32 %v1043_v29, %v997_v61  ;;  %v761_v61 = vadd.s32 216, %v2215_v1  ;;  %v1002_v63 = vsel %vm953_vm9, %v2365_v16, 0.0  ;;  %vm955_vm11 = vcmp.eq.s32.totalorder %v760_v40, %v2222_v3 }
 0x12b   :  { %v1149_v17 = vadd.f32 %v1148_v32, %v2360_v39  ;;  %v1229_v48 = vmax.f32 %v1225_v56, -1e+30  ;;  %v2591_v32 = vpop.f32.mrf.mxu3 }
 0x12c   :  { %v1045_v55 = vadd.f32 %v1044_v22, %v998_v20  ;;  %v762_v20 = vadd.s32 224, %v2215_v1  ;;  %vm956_vm12 = vcmp.eq.s32.totalorder %v761_v61, %v2222_v3 }
 0x12d   :  { %v1150_v51 = vadd.f32 %v1149_v17, %v2402_v11  ;;  %v1231_v5 = vmax.f32 %v1228_v54, %v1229_v48  ;;  %v1003_v17 = vsel %vm954_vm10, %v2411_v53, 0.0 }
 0x12e   :  { %v1046_v45 = vadd.f32 %v1045_v55, %v999_v13  ;;  %v763_v55 = vadd.s32 232, %v2215_v1  ;;  %vm957_vm13 = vcmp.eq.s32.totalorder %v762_v20, %v2222_v3 }
 0x12f   :  { %v1151_v43 = vadd.f32 %v1150_v51, %v2468_v58  ;;  %v1232_v62 = vmax.f32 %v2508_v47, %v1231_v5  ;;  %v1004_v51 = vsel %vm955_vm11, %v2479_v35, 0.0 }
 0x130   :  { %v1047_v52 = vadd.f32 %v1046_v45, %v1000_v18  ;;  %v764_v45 = vadd.s32 240, %v2215_v1  ;;  %vm958_vm14 = vcmp.eq.s32.totalorder %v763_v55, %v2222_v3 }
 0x131   :  { %v1152_v9 = vadd.f32 %v1151_v43, %v2512_v37  ;;  %v1233_v29 = vrot.slane %v1232_v62, 4  ;;  %v1005_v43 = vsel %vm956_vm12, %v2524_v25, 0.0 }
 0x132   :  { %v1048_v56 = vadd.f32 %v1047_v52, %v1001_v49  ;;  %v2608_v49 = vld [vmem:[#allocation2] sm:$0x1]  ;;  %vm959_vm15 = vcmp.eq.s32.totalorder %v764_v45, %v2222_v3  ;;  %v2866_v45 = vld [vmem:[#allocation9_spill] sm:$0xff] }
 0x133   :  { %v1153_v47 = vadd.f32 %v1152_v9, %v2365_v16  ;;  %v1234_v22 = vmax.f32 %v1232_v62, %v1233_v29  ;;  %2864 = vst [vmem:[#allocation11_spill] sm:$0xff] %v2608_v49  ;;  %v1006_v9 = vsel %vm957_vm13, %v2383_v38, 0.0 }
 0x134   :  { %v1049_v54 = vadd.f32 %v1048_v56, %v1002_v63  ;;  %v2613_v56 = vpop.f32.mrf.mxu3  ;;  %v765_v63 = vadd.s32 248, %v2215_v1 }
 0x135   :  { %v1154_v48 = vadd.f32 %v1153_v47, %v2411_v53  ;;  %v1235_v27 = vrot.slane %v1234_v22, 2 }
 0x136   :  { %v1050_v13 = vadd.f32 %v1049_v54, %v1003_v17  ;;  %vm960_vm0 = vcmp.eq.s32.totalorder %v765_v63, %v2222_v3 }
 0x137   :  { %v1155_v5 = vadd.f32 %v1154_v48, %v2479_v35  ;;  %v1236_v19 = vmax.f32 %v1234_v22, %v1235_v27  ;;  %v1007_v22 = vsel %vm958_vm14, %v2430_v41, 0.0  ;;  %v1008_v48 = vsel %vm959_vm15, %v2491_v6, 0.0 }
 0x138   :  { %v1051_v18 = vadd.f32 %v1050_v13, %v1004_v51  ;;  %v766_v51 = vadd.s32 256, %v2215_v1 }
 0x139   :  { %v1156_v62 = vadd.f32 %v1155_v5, %v2524_v25  ;;  %v1237_v40 = vrot.slane %v1236_v19, 1 }
 0x13a   :  { %v1052_v52 = vadd.f32 %v1051_v18, %v1005_v43  ;;  %vm961_vm1 = vcmp.eq.s32.totalorder %v766_v51, %v2222_v3 }
 0x13b   :  { %v1157_v29 = vadd.f32 %v1156_v62, %v2383_v38  ;;  %v1238_v61 = vmax.f32 %v1236_v19, %v1237_v40  ;;  %v1009_v40 = vsel %vm960_vm0, %v2538_v46, 0.0 }
 0x13c   :  { %v1053_v47 = vadd.f32 %v1052_v52, %v1006_v9  ;;  %v767_v9 = vadd.s32 264, %v2215_v1 }
 0x13d   :  { %v1158_v20 = vadd.f32 %v1157_v29, %v2430_v41  ;;  %v2619_v54 = vmax.f32 %v2608_v49, %v1238_v61  ;;  %v2869_v61 = vld [vmem:[#allocation14_spill] sm:$0xff] }
 0x13e   :  { %v1054_v17 = vadd.f32 %v1053_v47, %v1007_v22  ;;  %v2649_v47 = vpop.f32.mrf.mxu3  ;;  %v1010_v22 = vsel %vm961_vm1, %v2399_v44, 0.0  ;;  %vm962_vm2 = vcmp.eq.s32.totalorder %v767_v9, %v2222_v3 }
 0x13f   :  { %2865 = vst [vmem:[#allocation18_spill] sm:$0xff] %v2619_v54  ;;  %v1159_v27 = vadd.f32 %v1158_v20, %v2491_v6  ;;  %v2626_v13 = vperm.slane %v2619_v54, 0 }
 0x140   :  { %1447 = vst [vmem:[#allocation2] sm:$0x1] %v2619_v54  ;;  %v1055_v5 = vadd.f32 %v1054_v17, %v1008_v48  ;;  %v768_v17 = vadd.s32 272, %v2215_v1 }
 0x141   :  { %v1160_v19 = vadd.f32 %v1159_v27, %v2538_v46  ;;  %v1248_v18 = vsub.f32 %v2866_v45, %v2626_v13  ;;  %v1249_v43 = vsub.f32 %v2236_v10, %v2626_v13  ;;  %v1250_v62 = vsub.f32 %v2252_v21, %v2626_v13  ;;  %v2867_v27 = vld [vmem:[#allocation10_spill] sm:$0xff] }
 0x142   :  { %v1056_v29 = vadd.f32 %v1055_v5, %v1009_v40  ;;  %v1011_v45 = vsel %vm962_vm2, %v2443_v42, 0.0  ;;  %vm963_vm3 = vcmp.eq.s32.totalorder %v768_v17, %v2222_v3  ;;  %v771_v5 = vadd.s32 296, %v2215_v1 }
 0x143   :  { %v1161_v52 = vadd.f32 %v1160_v19, %v2399_v44  ;;  %v1252_v21 = vsub.f32 %v2867_v27, %v2626_v13  ;;  %v1256_v54 = vsub.f32 %v2869_v61, %v2626_v13  ;;  %v2716_v61 = vadd.s32 352, %v2215_v1 }
 0x144   :  { %v1057_v48 = vadd.f32 %v1056_v29, %v1010_v22  ;;  %vm966_vm6 = vcmp.eq.s32.totalorder %v771_v5, %v2222_v3 }
 0x145   :  { %v1162_v63 = vadd.f32 %v1161_v52, %v2443_v42  ;;  %v769_v52 = vadd.s32 280, %v2215_v1  ;;  %v1015_v5 = vsel %vm966_vm6, %v2459_v50, 0.0  ;;  %vm973_vm13 = vcmp.eq.s32.totalorder %v2716_v61, %v2222_v3 }
 0x146   :  { %v1058_v9 = vadd.f32 %v1057_v48, %v1011_v45  ;;  %v2675_v19 = vpop.f32.mrf.mxu3  ;;  %v1296_v48 = vmul.f32 1.442695, %v1248_v18  ;;  %v1298_v45 = vmul.f32 1.442695, %v1249_v43  ;;  %v772_v18 = vadd.s32 304, %v2215_v1 }
 0x147   :  { %v1163_v20 = vadd.f32 %v1162_v63, %v2505_v12  ;;  %vm964_vm4 = vcmp.eq.s32.totalorder %v769_v52, %v2222_v3  ;;  %v1300_v52 = vmul.f32 1.442695, %v1250_v62  ;;  %v2868_v62 = vld [vmem:[#allocation13_spill] sm:$0xff] }
 0x148   :  { %v1013_v29 = vsel %vm964_vm4, %v2551_v60, 0.0  ;;  %1604 = vpow2.f32 %v1296_v48  ;;  %v1254_v27 = vsub.f32 %v2868_v62, %v2626_v13  ;;  %v1304_v48 = vmul.f32 1.442695, %v1252_v21 }
 0x149   :  { %v1164_v51 = vadd.f32 %v1163_v20, %v2551_v60  ;;  %v1012_v20 = vsel %vm963_vm3, %v2505_v12, 0.0  ;;  %1606 = vpow2.f32 %v1298_v45  ;;  %vm967_vm7 = vcmp.eq.s32.totalorder %v772_v18, %v2222_v3  ;;  %v351_v12 = vpop.permute.xlu0 %350 }
 0x14a   :  { %v1059_v17 = vadd.f32 %v1058_v9, %v1012_v20  ;;  %1608 = vpow2.f32 %v1300_v52  ;;  %v774_v62 = vadd.s32 320, %v2215_v1  ;;  %v775_v21 = vadd.s32 328, %v2215_v1 }
 0x14b   :  { %v1165_v40 = vadd.f32 %v1164_v51, %v2424_v7  ;;  %v770_v51 = vadd.s32 288, %v2215_v1  ;;  %v776_v52 = vadd.s32 336, %v2215_v1  ;;  %v1308_v49 = vmul.f32 1.442695, %v1254_v27 }
 0x14c   :  { %v1060_v22 = vadd.f32 %v1059_v17, %v1013_v29  ;;  %v1253_v29 = vsub.f32 %v2314_v15, %v2626_v13  ;;  %vm969_vm9 = vcmp.eq.s32.totalorder %v774_v62, %v2222_v3  ;;  %vm970_vm10 = vcmp.eq.s32.totalorder %v775_v21, %v2222_v3 }
 0x14d   :  { %v1166_v55 = vadd.f32 %v1165_v40, %v2459_v50  ;;  %vm965_vm5 = vcmp.eq.s32.totalorder %v770_v51, %v2222_v3  ;;  %v1251_v40 = vsub.f32 %v2301_v4, %v2626_v13  ;;  %v773_v4 = vadd.s32 312, %v2215_v1  ;;  %v341_v51 = vpop.permute.xlu1 %340 }
 0x14e   :  { %v1014_v43 = vsel %vm965_vm5, %v2424_v7, 0.0  ;;  %v2693_v17 = vpop.f32.mrf.mxu3  ;;  %v1605_v45 = vpop.eup %1604  ;;  %v1306_v10 = vmul.f32 1.442695, %v1253_v29  ;;  %vm971_vm11 = vcmp.eq.s32.totalorder %v776_v52, %v2222_v3  ;;  %v1261_v62 = vsub.f32 %v2377_v24, %v2626_v13 }
 0x14f   :  { %v1167_v63 = vadd.f32 %v1166_v55, %v2529_v30  ;;  %v1061_v9 = vadd.f32 %v1060_v22, %v1014_v43  ;;  %v1302_v20 = vmul.f32 1.442695, %v1251_v40  ;;  %v1607_v22 = vpop.eup %1606  ;;  %v346_v43 = vpop.permute.xlu2 %345  ;;  %v1255_v40 = vsub.f32 %v2334_v23, %v2626_v13 }
 0x150   :  { %vm968_vm8 = vcmp.eq.s32.totalorder %v773_v4, %v2222_v3  ;;  %v2711_v23 = vadd.s32 344, %v2215_v1  ;;  %v715_v4 = vadd.f32 %v2613_v56, %v351_v12  ;;  %v780_v56 = vadd.s32 368, %v2215_v1 }
 0x151   :  { %v1168_v55 = vadd.f32 %v1167_v63, %v2556_v34  ;;  %v1062_v15 = vadd.f32 %v1061_v9, %v1015_v5  ;;  %1610 = vpow2.f32 %v1302_v20  ;;  %v1016_v9 = vsel %vm967_vm7, %v2529_v30, 0.0  ;;  %v1609_v5 = vpop.eup %1608 }
 0x152   :  { %1612 = vpow2.f32 %v1304_v48  ;;  %v1392_v20 = vadd.f32 %v1607_v22, %v1605_v45  ;;  %v1310_v50 = vmul.f32 1.442695, %v1255_v40  ;;  %v1718_v48 = vmov 0.0  }
 0x153   :  { %v1177_v63 = vrot.slane %v1168_v55, 4  ;;  %v1063_v60 = vadd.f32 %v1062_v15, %v1016_v9  ;;  %1614 = vpow2.f32 %v1306_v10  ;;  %23 = vst [vmem:[#allocation3] sm:$0x1] %v1718_v48  ;;  %v709_v30 = vadd.f32 %v2566_v0, %v341_v51 }
 0x154   :  { %v1393_v27 = vadd.f32 %v1609_v5, %v1392_v20  ;;  %1616 = vpow2.f32 %v1308_v49  ;;  %24 = vst [vmem:[#allocation4] sm:$0x1] %v1718_v48  ;;  %v1017_v10 = vsel %vm968_vm8, %v2556_v34, 0.0  ;;  %v712_v45 = vadd.f32 %v2591_v32, %v346_v43 }
 0x155   :  { %v1178_v29 = vadd.f32 %v1177_v63, %v1168_v55  ;;  %v1312_v55 = vmul.f32 1.442695, %v1256_v54  ;;  %25 = vst [vmem:[#allocation5] sm:$0x1] %v1718_v48  ;;  %v356_v40 = vpop.permute.xlu1 %355  ;;  %vm972_vm12 = vcmp.eq.s32.totalorder %v2711_v23, %v2222_v3  ;;  %v1064_v51 = vadd.f32 %v1063_v60, %v1017_v10 }
 0x156   :  { %v726_v0 = vpop.f32.mrf.mxu3  ;;  %1618 = vpow2.f32 %v1310_v50  ;;  %v2870_v49 = vsub.f32 %v2373_v36, %v2626_v13  ;;  %v779_v32 = vadd.s32 360, %v2215_v1  ;;  %v1018_v5 = vsel %vm969_vm9, %v709_v30, 0.0 }
 0x157   :  { %v1611_v18 = vpop.eup %1610  ;;  %v1179_v63 = vrot.slane %v1178_v29, 2  ;;  %v361_v20 = vpop.permute.xlu2 %360  ;;  %v1260_v50 = vsub.f32 %v2344_v14, %v2626_v13  ;;  %1620 = vpow2.f32 %v1312_v55  ;;  %v2871_v36 = vsub.f32 %v2416_v31, %v2626_v13 }
 0x158   :  { %v1394_v22 = vadd.f32 %v1611_v18, %v1393_v27  ;;  %v1613_v15 = vpop.eup %1612  ;;  %v1314_v54 = vmul.f32 1.442695, %v2870_v49  ;;  %v1019_v12 = vsel %vm970_vm10, %v712_v45, 0.0  ;;  %v2872_v14 = vsub.f32 %v2475_v33, %v2626_v13 }
 0x159   :  { %v1615_v9 = vpop.eup %1614  ;;  %v1316_v60 = vmul.f32 1.442695, %v2871_v36  ;;  %v1180_v27 = vadd.f32 %v1179_v63, %v1178_v29  ;;  %v1065_v55 = vadd.f32 %v1064_v51, %v1018_v5  ;;  %v1020_v31 = vsel %vm971_vm11, %v715_v4, 0.0  ;;  %v366_v51 = vpop.permute.xlu0 %365 }
 0x15a   :  { %v1395_v43 = vadd.f32 %v1613_v15, %v1394_v22  ;;  %v1617_v18 = vpop.eup %1616  ;;  %1622 = vpow2.f32 %v1314_v54  ;;  %v1318_v30 = vmul.f32 1.442695, %v2872_v14  ;;  %v718_v21 = vadd.f32 %v2649_v47, %v356_v40 }
 0x15b   :  { %vm974_vm14 = vcmp.eq.s32.totalorder %v779_v32, %v2222_v3  ;;  %v1262_v45 = vsub.f32 %v2435_v8, %v2626_v13  ;;  %1624 = vpow2.f32 %v1316_v60  ;;  %v1320_v24 = vmul.f32 1.442695, %v1260_v50 }
 0x15c   :  { %v1396_v48 = vadd.f32 %v1615_v9, %v1395_v43  ;;  %v1619_v29 = vpop.eup %1618  ;;  %v1066_v63 = vadd.f32 %v1065_v55, %v1019_v12  ;;  %v721_v22 = vadd.f32 %v2675_v19, %v361_v20  ;;  %vm975_vm15 = vcmp.eq.s32.totalorder %v780_v56, %v2222_v3 }
 0x15d   :  { %v1181_v33 = vrot.slane %v1180_v27, 1  ;;  %v1621_v52 = vpop.eup %1620  ;;  %v1263_v47 = vsub.f32 %v2483_v57, %v2626_v13  ;;  %1626 = vpow2.f32 %v1318_v30  ;;  %v1322_v40 = vmul.f32 1.442695, %v1261_v62  ;;  %v371_v9 = vpop.permute.xlu1 %370 }
 0x15e   :  { %v1397_v10 = vadd.f32 %v1617_v18, %v1396_v48  ;;  %v1067_v49 = vadd.f32 %v1066_v63, %v1020_v31  ;;  %v1021_v8 = vsel %vm972_vm12, %v718_v21, 0.0  ;;  %v724_v54 = vadd.f32 %v2693_v17, %v366_v51  ;;  %v729_v57 = vpop.f32.mrf.mxu3  ;;  %v1129_v31 = vld [vmem:[#allocation4] sm:$0x1] }
 0x15f   :  { %v781_v19 = vadd.s32 376, %v2215_v1  ;;  %v1264_v20 = vsub.f32 %v2352_v28, %v2626_v13  ;;  %1628 = vpow2.f32 %v1320_v24  ;;  %v1324_v5 = vmul.f32 1.442695, %v1262_v45  ;;  %v376_v48 = vpop.permute.xlu2 %375 }
 0x160   :  { %v1398_v15 = vadd.f32 %v1619_v29, %v1397_v10  ;;  %v1623_v43 = vpop.eup %1622  ;;  %v1068_v50 = vadd.f32 %v1067_v49, %v1021_v8  ;;  %v1022_v36 = vsel %vm973_vm13, %v721_v22, 0.0  ;;  %v727_v23 = vadd.f32 %v726_v0, %v371_v9 }
 0x161   :  { %v1182_v60 = vadd.f32 %v1181_v33, %v1180_v27  ;;  %v1625_v17 = vpop.eup %1624  ;;  %v1265_v1 = vsub.f32 %v2391_v2, %v2626_v13  ;;  %1630 = vpow2.f32 %v1322_v40  ;;  %v1326_v18 = vmul.f32 1.442695, %v1263_v47 }
 0x162   :  { %v1399_v4 = vadd.f32 %v1621_v52, %v1398_v15  ;;  %v1069_v62 = vadd.f32 %v1068_v50, %v1022_v36  ;;  %v1023_v28 = vsel %vm974_vm14, %v724_v54, 0.0  ;;  %v730_v30 = vadd.f32 %v729_v57, %v376_v48 }
 0x163   :  { %vm976_vm0 = vcmp.eq.s32.totalorder %v781_v19, %v2222_v3  ;;  %v1627_v61 = vpop.eup %1626  ;;  %v1266_v0 = vsub.f32 %v2454_v59, %v2626_v13  ;;  %1632 = vpow2.f32 %v1324_v5  ;;  %v1328_v27 = vmul.f32 1.442695, %v1264_v20 }
 0x164   :  { %v1400_v12 = vadd.f32 %v1623_v43, %v1399_v4  ;;  %v1070_v55 = vadd.f32 %v1069_v62, %v1023_v28  ;;  %v1024_v2 = vsel %vm975_vm15, %v727_v23, 0.0  ;;  %v1183_v10 = vadd.f32 %v1182_v60, %v1129_v31 }
 0x165   :  { %v1629_v29 = vpop.eup %1628  ;;  %v1267_v32 = vsub.f32 %v2495_v26, %v2626_v13  ;;  %1634 = vpow2.f32 %v1326_v18  ;;  %v1330_v45 = vmul.f32 1.442695, %v1265_v1  ;;  %v1025_v59 = vsel %vm976_vm0, %v730_v30, 0.0 }
 0x166   :  { %v1401_v14 = vadd.f32 %v1625_v17, %v1400_v12  ;;  %v1071_v24 = vadd.f32 %v1070_v55, %v1024_v2  ;;  %1184 = vst [vmem:[#allocation4] sm:$0x1] %v1183_v10  ;;  %v1268_v33 = vsub.f32 %v2360_v39, %v2626_v13  ;;  %1636 = vpow2.f32 %v1328_v27 }
 0x167   :  { %v1631_v22 = vpop.eup %1630  ;;  %v1332_v56 = vmul.f32 1.442695, %v1266_v0  ;;  %1638 = vpow2.f32 %v1330_v45  ;;  %v1334_v47 = vmul.f32 1.442695, %v1267_v32  ;;  %v2873_v19 = vsub.f32 %v2402_v11, %v2626_v13 }
 0x168   :  { %v1402_v21 = vadd.f32 %v1627_v61, %v1401_v14  ;;  %v1072_v15 = vadd.f32 %v1071_v24, %v1025_v59  ;;  %v1336_v8 = vmul.f32 1.442695, %v1268_v33  ;;  %v1272_v5 = vsub.f32 %v2365_v16, %v2626_v13  ;;  %v977_v14 = vld [vmem:[#allocation5] sm:$0x1] }
 0x169   :  { %v1633_v51 = vpop.eup %1632  ;;  %1640 = vpow2.f32 %v1332_v56  ;;  %v1338_v39 = vmul.f32 1.442695, %v2873_v19  ;;  %v2874_v57 = vsub.f32 %v2468_v58, %v2626_v13  ;;  %v1273_v12 = vsub.f32 %v2411_v53, %v2626_v13 }
 0x16a   :  { %v1403_v63 = vadd.f32 %v1629_v29, %v1402_v21  ;;  %v1073_v26 = vrot.slane %v1072_v15, 4  ;;  %1642 = vpow2.f32 %v1334_v47  ;;  %v2875_v11 = vsub.f32 %v2512_v37, %v2626_v13 }
 0x16b   :  { %v1635_v49 = vpop.eup %1634  ;;  %1644 = vpow2.f32 %v1336_v8  ;;  %v1340_v50 = vmul.f32 1.442695, %v2874_v57  ;;  %v1274_v16 = vsub.f32 %v2479_v35, %v2626_v13  ;;  %v1344_v58 = vmul.f32 1.442695, %v1272_v5  ;;  %v2880_v57 = vld [vmem:[#allocation12_spill] sm:$0xff] }
 0x16c   :  { %v1404_v52 = vadd.f32 %v1631_v22, %v1403_v63  ;;  %v1074_v54 = vadd.f32 %v1073_v26, %v1072_v15  ;;  %v1637_v4 = vpop.eup %1636  ;;  %1646 = vpow2.f32 %v1338_v39  ;;  %v1342_v17 = vmul.f32 1.442695, %v2875_v11 }
 0x16d   :  { %v1639_v20 = vpop.eup %1638  ;;  %1648 = vpow2.f32 %v1340_v50  ;;  %v1275_v53 = vsub.f32 %v2524_v25, %v2626_v13  ;;  %v1346_v61 = vmul.f32 1.442695, %v1273_v12  ;;  %v1276_v55 = vsub.f32 %v2383_v38, %v2626_v13 }
 0x16e   :  { %v1405_v40 = vadd.f32 %v1633_v51, %v1404_v52  ;;  %v1075_v43 = vrot.slane %v1074_v54, 2  ;;  %1650 = vpow2.f32 %v1342_v17  ;;  %v1348_v31 = vmul.f32 1.442695, %v1274_v16 }
 0x16f   :  { %v1641_v60 = vpop.eup %1640  ;;  %1652 = vpow2.f32 %v1344_v58  ;;  %v1277_v21 = vsub.f32 %v2430_v41, %v2626_v13  ;;  %v1350_v10 = vmul.f32 1.442695, %v1275_v53  ;;  %v1278_v32 = vsub.f32 %v2491_v6, %v2626_v13 }
 0x170   :  { %v1406_v3 = vadd.f32 %v1635_v49, %v1405_v40  ;;  %v1076_v36 = vadd.f32 %v1075_v43, %v1074_v54  ;;  %v1643_v18 = vpop.eup %1642  ;;  %1654 = vpow2.f32 %v1346_v61  ;;  %v1352_v45 = vmul.f32 1.442695, %v1276_v55 }
 0x171   :  { %v1645_v30 = vpop.eup %1644  ;;  %1656 = vpow2.f32 %v1348_v31  ;;  %v1279_v38 = vsub.f32 %v2538_v46, %v2626_v13  ;;  %v1354_v59 = vmul.f32 1.442695, %v1277_v21  ;;  %v1280_v41 = vsub.f32 %v2399_v44, %v2626_v13 }
 0x172   :  { %v1407_v9 = vadd.f32 %v1637_v4, %v1406_v3  ;;  %v1077_v48 = vrot.slane %v1076_v36, 1  ;;  %v1647_v27 = vpop.eup %1646  ;;  %1658 = vpow2.f32 %v1350_v10  ;;  %v1356_v56 = vmul.f32 1.442695, %v1278_v32  ;;  %v2877_v4 = vld [vmem:[#allocation16_spill] sm:$0xff] }
 0x173   :  { %v1649_v2 = vpop.eup %1648  ;;  %1660 = vpow2.f32 %v1352_v45  ;;  %v1358_v6 = vmul.f32 1.442695, %v1279_v38  ;;  %v1360_v26 = vmul.f32 1.442695, %v1280_v41  ;;  %v2876_v46 = vsub.f32 %v2443_v42, %v2626_v13 }
 0x174   :  { %v1408_v23 = vadd.f32 %v1639_v20, %v1407_v9  ;;  %v1078_v62 = vadd.f32 %v1077_v48, %v1076_v36  ;;  %v1651_v25 = vpop.eup %1650  ;;  %1662 = vpow2.f32 %v1354_v59  ;;  %v1284_v44 = vsub.f32 %v2424_v7, %v2626_v13  ;;  %v2879_v20 = vld [vmem:[#allocation15_spill] sm:$0xff] }
 0x175   :  { %v1653_v63 = vpop.eup %1652  ;;  %1664 = vpow2.f32 %v1356_v56  ;;  %v1362_v8 = vmul.f32 1.442695, %v2876_v46  ;;  %v2878_v19 = vsub.f32 %v2877_v4, %v2626_v13  ;;  %v1285_v5 = vsub.f32 %v2879_v20, %v2626_v13  ;;  %v2883_v59 = vld [vmem:[#allocation11_spill] sm:$0xff]  ;;  %v831_v20 = vld [vmem:[%s2840_s3] sm:$0x1] }
 0x176   :  { %v1409_v1 = vadd.f32 %v1641_v60, %v1408_v23  ;;  %v1079_v0 = vadd.f32 %v1078_v62, %v977_v14  ;;  %v1655_v33 = vpop.eup %1654  ;;  %1666 = vpow2.f32 %v1358_v6  ;;  %v2881_v42 = vsub.f32 %v2880_v57, %v2626_v13  ;;  %v2882_v60 = vld [vmem:[#allocation17_spill] sm:$0xff] }
 0x177   :  { %v1657_v52 = vpop.eup %1656  ;;  %1668 = vpow2.f32 %v1360_v26  ;;  %v1364_v39 = vmul.f32 1.442695, %v2878_v19  ;;  %v1286_v7 = vsub.f32 %v2882_v60, %v2626_v13  ;;  %v1368_v12 = vmul.f32 1.442695, %v1284_v44  ;;  %v1240_v26 = vld [vmem:[#allocation3] sm:$0x1] }
 0x178   :  { %v1410_v28 = vadd.f32 %v1643_v18, %v1409_v1  ;;  %1080 = vst [vmem:[#allocation5] sm:$0x1] %v1079_v0  ;;  %v1659_v47 = vpop.eup %1658  ;;  %1670 = vpow2.f32 %v1362_v8  ;;  %v1366_v50 = vmul.f32 1.442695, %v2881_v42  ;;  %v1287_v48 = vsub.f32 %v2556_v34, %v2626_v13  ;;  %v1451_v19 = vld [vmem:[#allocation2] sm:$0x1] }
 0x179   :  { %v1661_v49 = vpop.eup %1660  ;;  %1672 = vpow2.f32 %v1364_v39  ;;  %v1370_v1 = vmul.f32 1.442695, %v1285_v5  ;;  %v1288_v58 = vsub.f32 -1e+30, %v2626_v13  ;;  %v1372_v62 = vmul.f32 1.442695, %v1286_v7 }
 0x17a   :  { %v1411_v37 = vadd.f32 %v1645_v30, %v1410_v28  ;;  %v1663_v3 = vpop.eup %1662  ;;  %1674 = vpow2.f32 %v1366_v50  ;;  %v1374_v30 = vmul.f32 1.442695, %v1287_v48  ;;  %v1459_v39 = vld [vmem:[#allocation4] sm:$0x1]  ;;  %vm1465_vm1 = vcmp.ne.s32.totalorder %v831_v20, 4294967196 }
 0x17b   :  { %v1665_v9 = vpop.eup %1664  ;;  %1676 = vpow2.f32 %v1368_v12  ;;  %v1376_v0 = vmul.f32 1.442695, %v1288_v58  ;;  %v1460_v57 = vmul.f32 0.0003125, %v1459_v39 }
 0x17c   :  { %v1412_v35 = vadd.f32 %v1647_v27, %v1411_v37  ;;  %v1667_v23 = vpop.eup %1666  ;;  %1678 = vpow2.f32 %v1370_v1 }
 0x17d   :  { %v1669_v17 = vpop.eup %1668  ;;  %1680 = vpow2.f32 %v1372_v62 }
 0x17e   :  { %v1413_v29 = vadd.f32 %v1649_v2, %v1412_v35  ;;  %v1671_v16 = vpop.eup %1670  ;;  %1682 = vpow2.f32 %v1374_v30 }
 0x17f   :  { %v1673_v14 = vpop.eup %1672  ;;  %1684 = vpow2.f32 %v1376_v0  ;;  %v1456_v44 = vld [vmem:[#allocation5] sm:$0x1] }
 0x180   :  { %v1414_v24 = vadd.f32 %v1651_v25, %v1413_v29  ;;  %v1675_v61 = vpop.eup %1674 }
 0x181   :  { %v1677_v27 = vpop.eup %1676 }
 0x182   :  { %v1415_v22 = vadd.f32 %v1653_v63, %v1414_v24  ;;  %v1679_v55 = vpop.eup %1678 }
 0x183   :  { %v1681_v35 = vpop.eup %1680 }
 0x184   :  { %v1416_v15 = vadd.f32 %v1655_v33, %v1415_v22  ;;  %v1683_v13 = vpop.eup %1682  ;;  %v2884_v22 = vld [vmem:[#allocation18_spill] sm:$0xff] }
 0x185   :  { %v1685_v10 = vpop.eup %1684  ;;  %v2885_v33 = vsub.f32 %v2883_v59, %v2884_v22 }
 0x186   :  { %v1417_v51 = vadd.f32 %v1657_v52, %v1416_v15 }
 0x187   :  { %v1242_v41 = vmul.f32 1.442695, %v2885_v33 }
 0x188   :  { %v1418_v40 = vadd.f32 %v1659_v47, %v1417_v51 }
 0x189   :  { %1686 = vpow2.f32 %v1242_v41 }
 0x18a   :  { %v1419_v54 = vadd.f32 %v1661_v49, %v1418_v40 }
 0x18c   :  { %v1420_v43 = vadd.f32 %v1663_v3, %v1419_v54 }
 0x18e   :  { %v1421_v36 = vadd.f32 %v1665_v9, %v1420_v43  ;;  %v1457_v9 = vmul.f32 0.9, %v1456_v44 }
 0x18f   :  { %v1687_v47 = vpop.eup %1686 }
 0x190   :  { %v1422_v11 = vadd.f32 %v1667_v23, %v1421_v36  ;;  %v1244_v49 = vmul.f32 %v1687_v47, %v1240_v26 }
 0x192   :  { %v1423_v18 = vadd.f32 %v1669_v17, %v1422_v11 }
 0x194   :  { %v1424_v28 = vadd.f32 %v1671_v16, %v1423_v18 }
 0x196   :  { %v1425_v53 = vadd.f32 %v1673_v14, %v1424_v28 }
 0x198   :  { %v1426_v37 = vadd.f32 %v1675_v61, %v1425_v53 }
 0x19a   :  { %v1427_v34 = vadd.f32 %v1677_v27, %v1426_v37 }
 0x19c   :  { %v1428_v31 = vadd.f32 %v1679_v55, %v1427_v34 }
 0x19e   :  { %v1429_v2 = vadd.f32 %v1681_v35, %v1428_v31 }
 0x1a0   :  { %v1430_v21 = vadd.f32 %v1683_v13, %v1429_v2 }
 0x1a2   :  { %v1431_v29 = vadd.f32 %v1685_v10, %v1430_v21 }
 0x1a4   :  { %v1432_v25 = vadd.f32 %v1685_v10, %v1431_v29 }
 0x1a6   :  { %v1433_v32 = vadd.f32 %v1685_v10, %v1432_v25 }
 0x1a8   :  { %v1434_v45 = vadd.f32 %v1685_v10, %v1433_v32 }
 0x1aa   :  { %v1435_v24 = vadd.f32 %v1685_v10, %v1434_v45 }
 0x1ac   :  { %v1436_v63 = vadd.f32 %v1685_v10, %v1435_v24 }
 0x1ae   :  { %v1437_v38 = vadd.f32 %v1685_v10, %v1436_v63 }
 0x1b0   :  { %v1438_v56 = vadd.f32 %v1685_v10, %v1437_v38 }
 0x1b2   :  { %v1439_v15 = vrot.slane %v1438_v56, 4 }
 0x1b4   :  { %v1440_v52 = vadd.f32 %v1439_v15, %v1438_v56 }
 0x1b6   :  { %v1441_v6 = vrot.slane %v1440_v52, 2 }
 0x1b8   :  { %v1442_v51 = vadd.f32 %v1441_v6, %v1440_v52 }
 0x1ba   :  { %v1443_v40 = vrot.slane %v1442_v51, 1 }
 0x1bc   :  { %v1444_v46 = vadd.f32 %v1443_v40, %v1442_v51 }
 0x1be   :  { %v1445_v8 = vadd.f32 %v1444_v46, %v1244_v49 }
 0x1c0   :  { %1446 = vst [vmem:[#allocation3] sm:$0x1] %v1445_v8 }
 0x1c7   :  { %v1452_v54 = vld [vmem:[#allocation3] sm:$0x1] }
 0x1c8   :  { %1688 = vlog2.f32 %v1452_v54 }
 0x1ce   :  { %v1689_v3 = vpop.eup %1688 }
 0x1cf   :  { %v1454_v4 = vmul.f32 0.6931472, %v1689_v3 }
 0x1d1   :  { %v1455_v43 = vadd.f32 %v1454_v4, %v1451_v19 }
 0x1d3   :  { %v1458_v5 = vsub.f32 %v1455_v43, %v1457_v9  ;;  %v1462_v42 = vmul.f32 0.0001, %v1455_v43 }
 0x1d5   :  { %v1461_v50 = vsub.f32 %v1458_v5, %v1460_v57  ;;  %v1463_v36 = vmul.f32 %v1462_v42, %v1455_v43 }
 0x1d7   :  { %v1464_v23 = vadd.f32 %v1463_v36, %v1461_v50 }
 0x1d9   :  { %v1466_v60 = vsel %vm1465_vm1, %v1464_v23, 0.0 }
 0x1da   :  { %1467 = vst [vmem:[#allocation6] sm:$0x1] %v1466_v60 }
 0x1db   :  { %1478 = dma.vmem_to_hbm [thread:$0]  %s1474_s2, 16, %s1476_s30, [#allocation7]  }
 0x1dc   :  { %1714 = dma.done.wait [#allocation7], 16  }
 0x1dd   :  { %1715 = vsyncadd [#allocation7], 4294967280 }
 0x1de   :  { %1483 = vsyncpa [#allocation7], 1 }

</bundles_post_ra>
